<compile_context>
chip_gen: v5e
topology: v5e:2x2
jax: 0.10.0
libtpu: 0.0.40
codegen_flags: <defaults>
</compile_context>

<pallas_src>
import numpy as np
import jax
import jax.numpy as jnp
from jax import lax
from jax.experimental import pallas as pl
from jax.experimental.pallas import tpu as pltpu

# FlowMatchingConfig defaults used by the forward pass
SIGMA_MIN = 1e-5
MID_LOSS_WEIGHT = 1.0
TV_LOSS_WEIGHT = 1e-3
NUM_MIDPOINTS = 41
NOISE_SCALE = 0.01


# ---------------------------------------------------------------------------
# Fused kernel: interpolation + FLF overwrite + DiT stand-in + all loss sums
# ---------------------------------------------------------------------------
def _make_fused_kernel(B, C, D, HW, counts):
    """counts: length-D Python/numpy multiplicities (None => no mid loss)."""
    has_mid = counts is not None
    one_m = 1.0 - SIGMA_MIN
    counts_f = None if counts is None else [float(v) for v in counts]

    def kernel(*refs):
        if has_mid:
            t_ref, w_ref, x0_ref, x1_ref, ff_ref, lf_ref, zmid_ref, out_ref = refs
        else:
            t_ref, w_ref, x0_ref, x1_ref, ff_ref, lf_ref, out_ref = refs

        # Frame-index map along D at full lane width; built once, no array
        # constants captured from the enclosing trace.
        d_idx = lax.broadcasted_iota(jnp.int32, (D, HW), 0)
        is_first = d_idx == 0
        is_last = d_idx == D - 1
        is_edge = jnp.logical_or(is_first, is_last)

        # Static mid-frame multiplicities rebuilt in-kernel from Python floats.
        if has_mid:
            w_mid = jnp.where(is_first, counts_f[0], 0.0)
            for i in range(1, D):
                w_mid = jnp.where(d_idx == i, counts_f[i], w_mid)

        # DiT stand-in channel-mix weights: C*C SMEM scalar reads, hoisted out
        # of the batch loop.
        w = [[w_ref[c, e] for e in range(C)] for c in range(C)]

        sum_vel = 0.0
        sum_flf = 0.0
        sum_mid = 0.0
        sum_tv = 0.0

        # B is tiny: Python-unrolled batch loop inside a single grid step.
        for b in range(B):
            t = t_ref[b]                       # scalar from SMEM
            x0 = x0_ref[b]                     # (C, D, HW)
            x1 = x1_ref[b]
            ff = ff_ref[b]                     # (C, 1, HW)
            lf = lf_ref[b]

            # Optimal-transport interpolation + target velocity (VPU FMAs).
            xt = t * x1 + (1.0 - one_m * t) * x0
            vt = x1 - one_m * x0

            # First/last-frame overwrite in registers (two selects, no VMEM
            # scratch round trip).
            xt_flf = jnp.where(is_first, ff, xt)
            xt_flf = jnp.where(is_last, lf, xt_flf)

            # Fused deterministic DiT stand-in (CxC channel mix + 0.1*t bias),
            # squared errors accumulated across channels so only a couple of
            # cross-lane reductions run per batch.
            bias = 0.1 * t
            d2_acc = None
            for e in range(C):
                pred = xt_flf[0] * w[0][e]
                for c in range(1, C):
                    pred = pred + xt_flf[c] * w[c][e]
                diff = (pred + bias) - vt[e]
                d2 = diff * diff
                d2_acc = d2 if d2_acc is None else d2_acc + d2
            sum_vel = sum_vel + jnp.sum(d2_acc)
            sum_flf = sum_flf + jnp.sum(jnp.where(is_edge, d2_acc, 0.0))

            # Mid-frame loss with static multiplicities.
            if has_mid:
                zm = zmid_ref[b]
                dm2_acc = None
                for c in range(C):
                    dm = xt_flf[c] - zm[c]
                    dm2 = dm * dm
                    dm2_acc = dm2 if dm2_acc is None else dm2_acc + dm2
                sum_mid = sum_mid + jnp.sum(w_mid * dm2_acc)

            # Temporal TV on xt_flf.
            dtv = xt_flf[:, 1:, :] - xt_flf[:, :-1, :]
            sum_tv = sum_tv + jnp.sum(dtv * dtv)

        # Pack the four global sums into one full lane-dense (8,128) tile
        # (row 0, lanes 0..3); avoids any partial-sublane masked store.
        lane = lax.broadcasted_iota(jnp.int32, (8, 128), 1)
        packed = jnp.where(lane == 0, sum_vel, 0.0)
        packed = jnp.where(lane == 1, sum_flf, packed)
        packed = jnp.where(lane == 2, sum_mid, packed)
        packed = jnp.where(lane == 3, sum_tv, packed)
        out_ref[...] = packed.astype(jnp.float32)

    return kernel


def fused_loss_sums(t, dit_w, x0f, x1f, fff, lff, zmidf, counts):
    """Returns an (8, 128) tile; row 0 lanes 0..3 = vel, flf, mid, tv sums."""
    B, C, D, HW = x0f.shape
    kernel = _make_fused_kernel(B, C, D, HW, counts)
    full4 = lambda i: (0, 0, 0, 0)
    in_specs = [
        pl.BlockSpec(memory_space=pltpu.MemorySpace.SMEM),       # t     [B]
        pl.BlockSpec(memory_space=pltpu.MemorySpace.SMEM),       # dit_w [C, C]
        pl.BlockSpec((B, C, D, HW), full4),                      # x0
        pl.BlockSpec((B, C, D, HW), full4),                      # x1
        pl.BlockSpec((B, C, 1, HW), full4),                      # first frame
        pl.BlockSpec((B, C, 1, HW), full4),                      # last frame
    ]
    args = [t, dit_w, x0f, x1f, fff, lff]
    if counts is not None:
        in_specs.append(pl.BlockSpec((B, C, D, HW), full4))      # z_gt_mid
        args.append(zmidf)
    # Single grid step: on single-TC v5e/v6e this removes the per-step grid
    # overhead and doubles per-DMA size.  For v7x one may use grid=(B,) with
    # dimension_semantics=("parallel",) to split batches across TensorCores.
    return pl.pallas_call(
        kernel,
        out_shape=jax.ShapeDtypeStruct((8, 128), jnp.float32),
        grid=(1,),
        in_specs=in_specs,
        out_specs=pl.BlockSpec((8, 128), lambda i: (0, 0)),
    )(*args)


# ---------------------------------------------------------------------------
# External DiT model stand-in (deterministic) -- used only by the reference
# ---------------------------------------------------------------------------
# TODO(synk): dit_model is an external nn.Module in the PyTorch spec; here a
# deterministic channel-mix + time-bias stand-in is fused directly into the
# Pallas kernel (frozen_mask is ignored, as the stand-in has no use for it).
# A real DiT would require splitting the kernel at the xt_flf boundary.
def dit_model_standin(xt_flf, t, first_frame, last_frame, w):
    vt = jnp.einsum('bcdhw,ce->bedhw', xt_flf, w)
    return vt + t[:, None, None, None, None] * 0.1


# ---------------------------------------------------------------------------
# FlowMatching.forward == compute_loss
# ---------------------------------------------------------------------------
def flow_matching_forward(x1, first_frame, last_frame, dit_w, key, z_gt_mid=None):
    B, C, D, H, W = x1.shape
    HW = H * W

    k0, kt = jax.random.split(key)
    # TODO(synk): x0 could be generated in-kernel (pltpu PRNG) to drop this
    # HBM stream; kept in XLA for bit-exact parity with the jax.random ref.
    x0 = NOISE_SCALE * jax.random.normal(k0, x1.shape, dtype=x1.dtype)  # randn_like * 0.01
    t = jax.random.uniform(kt, (B,), dtype=x1.dtype)                    # uniform time sampling

    x0f = x0.reshape(B, C, D, HW)
    x1f = x1.reshape(B, C, D, HW)
    fff = first_frame.reshape(B, C, 1, HW)
    lff = last_frame.reshape(B, C, 1, HW)

    # Static mid-frame multiplicities (matches np.linspace(..., dtype=int));
    # the z_gt_mid=None case is specialized (no zero tensor, no dead reduce).
    if z_gt_mid is not None and NUM_MIDPOINTS > 0:
        T = z_gt_mid.shape[2]
        mid_ids = np.linspace(1, T - 2, num=min(NUM_MIDPOINTS, max(T - 2, 1)), dtype=int)
        counts = np.zeros((D,), dtype=np.float32)
        for i in mid_ids:
            counts[int(i)] += 1.0
        n_mid = len(mid_ids)
        zmidf = z_gt_mid.reshape(B, C, D, HW)
    else:
        counts = None
        n_mid = 1
        zmidf = None

    sums = fused_loss_sums(t, dit_w, x0f, x1f, fff, lff, zmidf, counts)[0]

    loss_velocity = sums[0] / (B * C * D * HW)
    loss_flf = sums[1] / (B * C * 2 * HW)
    loss_mid = sums[2] / (n_mid * B * C * HW)
    loss_tv = sums[3] / (B * C * (D - 1) * HW)
    # TODO(synk): the vt_pred/vt_target shape-mismatch F.interpolate(bilinear)
    # fallback branch is not implemented — the stand-in DiT preserves shape.
    return {
        'loss_velocity': loss_velocity,
        'loss_flf': loss_flf,
        'loss_mid': loss_mid * MID_LOSS_WEIGHT,
        'loss_tv': loss_tv * TV_LOSS_WEIGHT,
    }


# ---------------------------------------------------------------------------
# Pure-JAX reference (mirrors the PyTorch semantics) for verification
# ---------------------------------------------------------------------------
def reference_losses(x1, first_frame, last_frame, dit_w, key, z_gt_mid):
    B, C, D, H, W = x1.shape
    k0, kt = jax.random.split(key)
    x0 = NOISE_SCALE * jax.random.normal(k0, x1.shape, dtype=x1.dtype)
    t = jax.random.uniform(kt, (B,), dtype=x1.dtype)
    t5 = t.reshape(-1, 1, 1, 1, 1)
    xt = t5 * x1 + (1.0 - (1.0 - SIGMA_MIN) * t5) * x0
    vt = x1 - (1.0 - SIGMA_MIN) * x0
    xt_flf = xt.at[:, :, 0].set(first_frame[:, :, 0]).at[:, :, -1].set(last_frame[:, :, -1])
    vt_pred = dit_model_standin(xt_flf, t, first_frame, last_frame, dit_w)
    loss_velocity = jnp.mean((vt_pred - vt) ** 2)
    sel_p = jnp.stack([vt_pred[:, :, 0], vt_pred[:, :, -1]], axis=2)
    sel_t = jnp.stack([vt[:, :, 0], vt[:, :, -1]], axis=2)
    loss_flf = jnp.mean((sel_p - sel_t) ** 2)
    T = z_gt_mid.shape[2]
    mid_ids = np.linspace(1, T - 2, num=min(NUM_MIDPOINTS, max(T - 2, 1)), dtype=int)
    loss_mid = jnp.mean(jnp.stack(
        [jnp.mean((xt_flf[:, :, int(i)] - z_gt_mid[:, :, int(i)]) ** 2) for i in mid_ids]))
    loss_tv = jnp.mean((xt_flf[:, :, 1:] - xt_flf[:, :, :-1]) ** 2)
    return {
        'loss_velocity': loss_velocity,
        'loss_flf': loss_flf,
        'loss_mid': loss_mid * MID_LOSS_WEIGHT,
        'loss_tv': loss_tv * TV_LOSS_WEIGHT,
    }


if __name__ == "__main__":
    key = jax.random.PRNGKey(0)
    kx, kf, kl, kz, kw, kfm = jax.random.split(key, 6)

    B, C, D, H, W = 2, 4, 8, 16, 16
    x1 = jax.random.normal(kx, (B, C, D, H, W), jnp.float32)
    first_frame = jax.random.normal(kf, (B, C, 1, H, W), jnp.float32)
    last_frame = jax.random.normal(kl, (B, C, 1, H, W), jnp.float32)
    z_gt_mid = jax.random.normal(kz, (B, C, D, H, W), jnp.float32)
    dit_w = 0.1 * jax.random.normal(kw, (C, C), jnp.float32)  # deterministic stand-in weights

    losses = flow_matching_forward(x1, first_frame, last_frame, dit_w, kfm, z_gt_mid=z_gt_mid)
    jax.block_until_ready(losses)

    ref = reference_losses(x1, first_frame, last_frame, dit_w, kfm, z_gt_mid)
    for name in losses:
        np.testing.assert_allclose(np.asarray(losses[name]), np.asarray(ref[name]),
                                   rtol=3e-4, atol=1e-6)

    # Also exercise the specialized z_gt_mid=None path.
    losses_nomid = flow_matching_forward(x1, first_frame, last_frame, dit_w, kfm, z_gt_mid=None)
    jax.block_until_ready(losses_nomid)
    np.testing.assert_allclose(np.asarray(losses_nomid['loss_mid']), 0.0, atol=1e-12)
    np.testing.assert_allclose(np.asarray(losses_nomid['loss_velocity']),
                               np.asarray(ref['loss_velocity']), rtol=3e-4, atol=1e-6)

    print("KERNEL_OK")
</pallas_src>

<mosaic_0001>
module attributes {stable_mosaic.version = 11 : i64} {
  func.func @kernel(%arg0: i32, %arg1: memref<2xf32, #tpu.memory_space<smem>>, %arg2: memref<4x4xf32, #tpu.memory_space<smem>>, %arg3: memref<2x4x8x256xf32, #tpu.memory_space<vmem>>, %arg4: memref<2x4x8x256xf32, #tpu.memory_space<vmem>>, %arg5: memref<2x4x1x256xf32, #tpu.memory_space<vmem>>, %arg6: memref<2x4x1x256xf32, #tpu.memory_space<vmem>>, %arg7: memref<2x4x8x256xf32, #tpu.memory_space<vmem>>, %arg8: memref<8x128xf32, #tpu.memory_space<vmem>>) attributes {dimension_semantics = [#tpu.dimension_semantics<arbitrary>], iteration_bounds = array<i64: 1>, scalar_prefetch = 0 : i64, scratch_operands = 0 : i64, tpu.core_type = #tpu.core_type<tc>, window_params = [{transform_indices = @transform_0, window_bounds = array<i64: 2>}, {transform_indices = @transform_1, window_bounds = array<i64: 4, 4>}, {pipeline_mode = #tpu.pipeline_mode<synchronous>, transform_indices = @transform_2, window_bounds = array<i64: 2, 4, 8, 256>}, {pipeline_mode = #tpu.pipeline_mode<synchronous>, transform_indices = @transform_3, window_bounds = array<i64: 2, 4, 8, 256>}, {pipeline_mode = #tpu.pipeline_mode<synchronous>, transform_indices = @transform_4, window_bounds = array<i64: 2, 4, 1, 256>}, {pipeline_mode = #tpu.pipeline_mode<synchronous>, transform_indices = @transform_5, window_bounds = array<i64: 2, 4, 1, 256>}, {pipeline_mode = #tpu.pipeline_mode<synchronous>, transform_indices = @transform_6, window_bounds = array<i64: 2, 4, 8, 256>}, {pipeline_mode = #tpu.pipeline_mode<synchronous>, transform_indices = @transform_7, window_bounds = array<i64: 8, 128>}]} {
    %0 = tpu.iota {dimensions = array<i32: 0>} : vector<8x256xi32>
    %c0_i32 = arith.constant 0 : i32
    %1 = vector.broadcast %c0_i32 : i32 to vector<8x256xi32>
    %2 = arith.cmpi eq, %0, %1 : vector<8x256xi32>
    %c7_i32 = arith.constant 7 : i32
    %3 = vector.broadcast %c7_i32 : i32 to vector<8x256xi32>
    %4 = arith.cmpi eq, %0, %3 : vector<8x256xi32>
    %5 = arith.ori %2, %4 : vector<8x256xi1>
    %cst = arith.constant 0.000000e+00 : f32
    %cst_0 = arith.constant 0.000000e+00 : f32
    %6 = vector.broadcast %cst : f32 to vector<8x256xf32>
    %7 = vector.broadcast %cst_0 : f32 to vector<8x256xf32>
    %8 = arith.select %2, %6, %7 : vector<8x256xi1>, vector<8x256xf32>
    %c1_i32 = arith.constant 1 : i32
    %9 = vector.broadcast %c1_i32 : i32 to vector<8x256xi32>
    %10 = arith.cmpi eq, %0, %9 : vector<8x256xi32>
    %cst_1 = arith.constant 1.000000e+00 : f32
    %11 = vector.broadcast %cst_1 : f32 to vector<8x256xf32>
    %12 = arith.select %10, %11, %8 : vector<8x256xi1>, vector<8x256xf32>
    %c2_i32 = arith.constant 2 : i32
    %13 = vector.broadcast %c2_i32 : i32 to vector<8x256xi32>
    %14 = arith.cmpi eq, %0, %13 : vector<8x256xi32>
    %cst_2 = arith.constant 1.000000e+00 : f32
    %15 = vector.broadcast %cst_2 : f32 to vector<8x256xf32>
    %16 = arith.select %14, %15, %12 : vector<8x256xi1>, vector<8x256xf32>
    %c3_i32 = arith.constant 3 : i32
    %17 = vector.broadcast %c3_i32 : i32 to vector<8x256xi32>
    %18 = arith.cmpi eq, %0, %17 : vector<8x256xi32>
    %cst_3 = arith.constant 1.000000e+00 : f32
    %19 = vector.broadcast %cst_3 : f32 to vector<8x256xf32>
    %20 = arith.select %18, %19, %16 : vector<8x256xi1>, vector<8x256xf32>
    %c4_i32 = arith.constant 4 : i32
    %21 = vector.broadcast %c4_i32 : i32 to vector<8x256xi32>
    %22 = arith.cmpi eq, %0, %21 : vector<8x256xi32>
    %cst_4 = arith.constant 1.000000e+00 : f32
    %23 = vector.broadcast %cst_4 : f32 to vector<8x256xf32>
    %24 = arith.select %22, %23, %20 : vector<8x256xi1>, vector<8x256xf32>
    %c5_i32 = arith.constant 5 : i32
    %25 = vector.broadcast %c5_i32 : i32 to vector<8x256xi32>
    %26 = arith.cmpi eq, %0, %25 : vector<8x256xi32>
    %cst_5 = arith.constant 1.000000e+00 : f32
    %27 = vector.broadcast %cst_5 : f32 to vector<8x256xf32>
    %28 = arith.select %26, %27, %24 : vector<8x256xi1>, vector<8x256xf32>
    %c6_i32 = arith.constant 6 : i32
    %29 = vector.broadcast %c6_i32 : i32 to vector<8x256xi32>
    %30 = arith.cmpi eq, %0, %29 : vector<8x256xi32>
    %cst_6 = arith.constant 1.000000e+00 : f32
    %31 = vector.broadcast %cst_6 : f32 to vector<8x256xf32>
    %32 = arith.select %30, %31, %28 : vector<8x256xi1>, vector<8x256xf32>
    %c7_i32_7 = arith.constant 7 : i32
    %33 = vector.broadcast %c7_i32_7 : i32 to vector<8x256xi32>
    %34 = arith.cmpi eq, %0, %33 : vector<8x256xi32>
    %cst_8 = arith.constant 0.000000e+00 : f32
    %35 = vector.broadcast %cst_8 : f32 to vector<8x256xf32>
    %36 = arith.select %34, %35, %32 : vector<8x256xi1>, vector<8x256xf32>
    %c0 = arith.constant 0 : index
    %c0_9 = arith.constant 0 : index
    %37 = memref.load %arg2[%c0, %c0_9] : memref<4x4xf32, #tpu.memory_space<smem>>
    %c0_10 = arith.constant 0 : index
    %c1 = arith.constant 1 : index
    %38 = memref.load %arg2[%c0_10, %c1] : memref<4x4xf32, #tpu.memory_space<smem>>
    %c0_11 = arith.constant 0 : index
    %c2 = arith.constant 2 : index
    %39 = memref.load %arg2[%c0_11, %c2] : memref<4x4xf32, #tpu.memory_space<smem>>
    %c0_12 = arith.constant 0 : index
    %c3 = arith.constant 3 : index
    %40 = memref.load %arg2[%c0_12, %c3] : memref<4x4xf32, #tpu.memory_space<smem>>
    %c1_13 = arith.constant 1 : index
    %c0_14 = arith.constant 0 : index
    %41 = memref.load %arg2[%c1_13, %c0_14] : memref<4x4xf32, #tpu.memory_space<smem>>
    %c1_15 = arith.constant 1 : index
    %c1_16 = arith.constant 1 : index
    %42 = memref.load %arg2[%c1_15, %c1_16] : memref<4x4xf32, #tpu.memory_space<smem>>
    %c1_17 = arith.constant 1 : index
    %c2_18 = arith.constant 2 : index
    %43 = memref.load %arg2[%c1_17, %c2_18] : memref<4x4xf32, #tpu.memory_space<smem>>
    %c1_19 = arith.constant 1 : index
    %c3_20 = arith.constant 3 : index
    %44 = memref.load %arg2[%c1_19, %c3_20] : memref<4x4xf32, #tpu.memory_space<smem>>
    %c2_21 = arith.constant 2 : index
    %c0_22 = arith.constant 0 : index
    %45 = memref.load %arg2[%c2_21, %c0_22] : memref<4x4xf32, #tpu.memory_space<smem>>
    %c2_23 = arith.constant 2 : index
    %c1_24 = arith.constant 1 : index
    %46 = memref.load %arg2[%c2_23, %c1_24] : memref<4x4xf32, #tpu.memory_space<smem>>
    %c2_25 = arith.constant 2 : index
    %c2_26 = arith.constant 2 : index
    %47 = memref.load %arg2[%c2_25, %c2_26] : memref<4x4xf32, #tpu.memory_space<smem>>
    %c2_27 = arith.constant 2 : index
    %c3_28 = arith.constant 3 : index
    %48 = memref.load %arg2[%c2_27, %c3_28] : memref<4x4xf32, #tpu.memory_space<smem>>
    %c3_29 = arith.constant 3 : index
    %c0_30 = arith.constant 0 : index
    %49 = memref.load %arg2[%c3_29, %c0_30] : memref<4x4xf32, #tpu.memory_space<smem>>
    %c3_31 = arith.constant 3 : index
    %c1_32 = arith.constant 1 : index
    %50 = memref.load %arg2[%c3_31, %c1_32] : memref<4x4xf32, #tpu.memory_space<smem>>
    %c3_33 = arith.constant 3 : index
    %c2_34 = arith.constant 2 : index
    %51 = memref.load %arg2[%c3_33, %c2_34] : memref<4x4xf32, #tpu.memory_space<smem>>
    %c3_35 = arith.constant 3 : index
    %c3_36 = arith.constant 3 : index
    %52 = memref.load %arg2[%c3_35, %c3_36] : memref<4x4xf32, #tpu.memory_space<smem>>
    %c0_37 = arith.constant 0 : index
    %53 = memref.load %arg1[%c0_37] : memref<2xf32, #tpu.memory_space<smem>>
    %c0_38 = arith.constant 0 : index
    %c0_39 = arith.constant 0 : index
    %c0_40 = arith.constant 0 : index
    %c0_41 = arith.constant 0 : index
    %54 = vector.load %arg3[%c0_38, %c0_39, %c0_40, %c0_41] : memref<2x4x8x256xf32, #tpu.memory_space<vmem>>, vector<1x4x8x256xf32>
    %55 = vector.shape_cast %54 : vector<1x4x8x256xf32> to vector<4x8x256xf32>
    %c0_42 = arith.constant 0 : index
    %c0_43 = arith.constant 0 : index
    %c0_44 = arith.constant 0 : index
    %c0_45 = arith.constant 0 : index
    %56 = vector.load %arg4[%c0_42, %c0_43, %c0_44, %c0_45] : memref<2x4x8x256xf32, #tpu.memory_space<vmem>>, vector<1x4x8x256xf32>
    %57 = vector.shape_cast %56 : vector<1x4x8x256xf32> to vector<4x8x256xf32>
    %c0_46 = arith.constant 0 : index
    %c0_47 = arith.constant 0 : index
    %c0_48 = arith.constant 0 : index
    %c0_49 = arith.constant 0 : index
    %58 = vector.load %arg5[%c0_46, %c0_47, %c0_48, %c0_49] : memref<2x4x1x256xf32, #tpu.memory_space<vmem>>, vector<1x4x1x256xf32>
    %59 = vector.shape_cast %58 : vector<1x4x1x256xf32> to vector<4x1x256xf32>
    %c0_50 = arith.constant 0 : index
    %c0_51 = arith.constant 0 : index
    %c0_52 = arith.constant 0 : index
    %c0_53 = arith.constant 0 : index
    %60 = vector.load %arg6[%c0_50, %c0_51, %c0_52, %c0_53] : memref<2x4x1x256xf32, #tpu.memory_space<vmem>>, vector<1x4x1x256xf32>
    %61 = vector.shape_cast %60 : vector<1x4x1x256xf32> to vector<4x1x256xf32>
    %62 = vector.broadcast %53 : f32 to vector<4x8x256xf32>
    %63 = arith.mulf %62, %57 : vector<4x8x256xf32>
    %cst_54 = arith.constant 0.999989986 : f32
    %64 = arith.mulf %cst_54, %53 : f32
    %cst_55 = arith.constant 1.000000e+00 : f32
    %65 = arith.subf %cst_55, %64 : f32
    %66 = vector.broadcast %65 : f32 to vector<4x8x256xf32>
    %67 = arith.mulf %66, %55 : vector<4x8x256xf32>
    %68 = arith.addf %63, %67 : vector<4x8x256xf32>
    %cst_56 = arith.constant 0.999989986 : f32
    %69 = vector.broadcast %cst_56 : f32 to vector<4x8x256xf32>
    %70 = arith.mulf %69, %55 : vector<4x8x256xf32>
    %71 = arith.subf %57, %70 : vector<4x8x256xf32>
    %72 = vector.shape_cast %2 : vector<8x256xi1> to vector<1x8x256xi1>
    %73 = vector.broadcast %72 : vector<1x8x256xi1> to vector<4x8x256xi1>
    %74 = vector.shape_cast %59 : vector<4x1x256xf32> to vector<4x1x256xf32>
    %75 = vector.broadcast %74 : vector<4x1x256xf32> to vector<4x8x256xf32>
    %76 = arith.select %73, %75, %68 : vector<4x8x256xi1>, vector<4x8x256xf32>
    %77 = vector.shape_cast %4 : vector<8x256xi1> to vector<1x8x256xi1>
    %78 = vector.broadcast %77 : vector<1x8x256xi1> to vector<4x8x256xi1>
    %79 = vector.shape_cast %61 : vector<4x1x256xf32> to vector<4x1x256xf32>
    %80 = vector.broadcast %79 : vector<4x1x256xf32> to vector<4x8x256xf32>
    %81 = arith.select %78, %80, %76 : vector<4x8x256xi1>, vector<4x8x256xf32>
    %cst_57 = arith.constant 1.000000e-01 : f32
    %82 = arith.mulf %cst_57, %53 : f32
    %83 = vector.extract_strided_slice %81 {offsets = [0, 0, 0], sizes = [1, 8, 256], strides = [1, 1, 1]} : vector<4x8x256xf32> to vector<1x8x256xf32>
    %84 = vector.shape_cast %83 : vector<1x8x256xf32> to vector<8x256xf32>
    %85 = vector.broadcast %37 : f32 to vector<8x256xf32>
    %86 = arith.mulf %84, %85 : vector<8x256xf32>
    %87 = vector.extract_strided_slice %81 {offsets = [1, 0, 0], sizes = [1, 8, 256], strides = [1, 1, 1]} : vector<4x8x256xf32> to vector<1x8x256xf32>
    %88 = vector.shape_cast %87 : vector<1x8x256xf32> to vector<8x256xf32>
    %89 = vector.broadcast %41 : f32 to vector<8x256xf32>
    %90 = arith.mulf %88, %89 : vector<8x256xf32>
    %91 = arith.addf %86, %90 : vector<8x256xf32>
    %92 = vector.extract_strided_slice %81 {offsets = [2, 0, 0], sizes = [1, 8, 256], strides = [1, 1, 1]} : vector<4x8x256xf32> to vector<1x8x256xf32>
    %93 = vector.shape_cast %92 : vector<1x8x256xf32> to vector<8x256xf32>
    %94 = vector.broadcast %45 : f32 to vector<8x256xf32>
    %95 = arith.mulf %93, %94 : vector<8x256xf32>
    %96 = arith.addf %91, %95 : vector<8x256xf32>
    %97 = vector.extract_strided_slice %81 {offsets = [3, 0, 0], sizes = [1, 8, 256], strides = [1, 1, 1]} : vector<4x8x256xf32> to vector<1x8x256xf32>
    %98 = vector.shape_cast %97 : vector<1x8x256xf32> to vector<8x256xf32>
    %99 = vector.broadcast %49 : f32 to vector<8x256xf32>
    %100 = arith.mulf %98, %99 : vector<8x256xf32>
    %101 = arith.addf %96, %100 : vector<8x256xf32>
    %102 = vector.broadcast %82 : f32 to vector<8x256xf32>
    %103 = arith.addf %101, %102 : vector<8x256xf32>
    %104 = vector.extract_strided_slice %71 {offsets = [0, 0, 0], sizes = [1, 8, 256], strides = [1, 1, 1]} : vector<4x8x256xf32> to vector<1x8x256xf32>
    %105 = vector.shape_cast %104 : vector<1x8x256xf32> to vector<8x256xf32>
    %106 = arith.subf %103, %105 : vector<8x256xf32>
    %107 = arith.mulf %106, %106 : vector<8x256xf32>
    %108 = vector.extract_strided_slice %81 {offsets = [0, 0, 0], sizes = [1, 8, 256], strides = [1, 1, 1]} : vector<4x8x256xf32> to vector<1x8x256xf32>
    %109 = vector.shape_cast %108 : vector<1x8x256xf32> to vector<8x256xf32>
    %110 = vector.broadcast %38 : f32 to vector<8x256xf32>
    %111 = arith.mulf %109, %110 : vector<8x256xf32>
    %112 = vector.extract_strided_slice %81 {offsets = [1, 0, 0], sizes = [1, 8, 256], strides = [1, 1, 1]} : vector<4x8x256xf32> to vector<1x8x256xf32>
    %113 = vector.shape_cast %112 : vector<1x8x256xf32> to vector<8x256xf32>
    %114 = vector.broadcast %42 : f32 to vector<8x256xf32>
    %115 = arith.mulf %113, %114 : vector<8x256xf32>
    %116 = arith.addf %111, %115 : vector<8x256xf32>
    %117 = vector.extract_strided_slice %81 {offsets = [2, 0, 0], sizes = [1, 8, 256], strides = [1, 1, 1]} : vector<4x8x256xf32> to vector<1x8x256xf32>
    %118 = vector.shape_cast %117 : vector<1x8x256xf32> to vector<8x256xf32>
    %119 = vector.broadcast %46 : f32 to vector<8x256xf32>
    %120 = arith.mulf %118, %119 : vector<8x256xf32>
    %121 = arith.addf %116, %120 : vector<8x256xf32>
    %122 = vector.extract_strided_slice %81 {offsets = [3, 0, 0], sizes = [1, 8, 256], strides = [1, 1, 1]} : vector<4x8x256xf32> to vector<1x8x256xf32>
    %123 = vector.shape_cast %122 : vector<1x8x256xf32> to vector<8x256xf32>
    %124 = vector.broadcast %50 : f32 to vector<8x256xf32>
    %125 = arith.mulf %123, %124 : vector<8x256xf32>
    %126 = arith.addf %121, %125 : vector<8x256xf32>
    %127 = vector.broadcast %82 : f32 to vector<8x256xf32>
    %128 = arith.addf %126, %127 : vector<8x256xf32>
    %129 = vector.extract_strided_slice %71 {offsets = [1, 0, 0], sizes = [1, 8, 256], strides = [1, 1, 1]} : vector<4x8x256xf32> to vector<1x8x256xf32>
    %130 = vector.shape_cast %129 : vector<1x8x256xf32> to vector<8x256xf32>
    %131 = arith.subf %128, %130 : vector<8x256xf32>
    %132 = arith.mulf %131, %131 : vector<8x256xf32>
    %133 = arith.addf %107, %132 : vector<8x256xf32>
    %134 = vector.extract_strided_slice %81 {offsets = [0, 0, 0], sizes = [1, 8, 256], strides = [1, 1, 1]} : vector<4x8x256xf32> to vector<1x8x256xf32>
    %135 = vector.shape_cast %134 : vector<1x8x256xf32> to vector<8x256xf32>
    %136 = vector.broadcast %39 : f32 to vector<8x256xf32>
    %137 = arith.mulf %135, %136 : vector<8x256xf32>
    %138 = vector.extract_strided_slice %81 {offsets = [1, 0, 0], sizes = [1, 8, 256], strides = [1, 1, 1]} : vector<4x8x256xf32> to vector<1x8x256xf32>
    %139 = vector.shape_cast %138 : vector<1x8x256xf32> to vector<8x256xf32>
    %140 = vector.broadcast %43 : f32 to vector<8x256xf32>
    %141 = arith.mulf %139, %140 : vector<8x256xf32>
    %142 = arith.addf %137, %141 : vector<8x256xf32>
    %143 = vector.extract_strided_slice %81 {offsets = [2, 0, 0], sizes = [1, 8, 256], strides = [1, 1, 1]} : vector<4x8x256xf32> to vector<1x8x256xf32>
    %144 = vector.shape_cast %143 : vector<1x8x256xf32> to vector<8x256xf32>
    %145 = vector.broadcast %47 : f32 to vector<8x256xf32>
    %146 = arith.mulf %144, %145 : vector<8x256xf32>
    %147 = arith.addf %142, %146 : vector<8x256xf32>
    %148 = vector.extract_strided_slice %81 {offsets = [3, 0, 0], sizes = [1, 8, 256], strides = [1, 1, 1]} : vector<4x8x256xf32> to vector<1x8x256xf32>
    %149 = vector.shape_cast %148 : vector<1x8x256xf32> to vector<8x256xf32>
    %150 = vector.broadcast %51 : f32 to vector<8x256xf32>
    %151 = arith.mulf %149, %150 : vector<8x256xf32>
    %152 = arith.addf %147, %151 : vector<8x256xf32>
    %153 = vector.broadcast %82 : f32 to vector<8x256xf32>
    %154 = arith.addf %152, %153 : vector<8x256xf32>
    %155 = vector.extract_strided_slice %71 {offsets = [2, 0, 0], sizes = [1, 8, 256], strides = [1, 1, 1]} : vector<4x8x256xf32> to vector<1x8x256xf32>
    %156 = vector.shape_cast %155 : vector<1x8x256xf32> to vector<8x256xf32>
    %157 = arith.subf %154, %156 : vector<8x256xf32>
    %158 = arith.mulf %157, %157 : vector<8x256xf32>
    %159 = arith.addf %133, %158 : vector<8x256xf32>
    %160 = vector.extract_strided_slice %81 {offsets = [0, 0, 0], sizes = [1, 8, 256], strides = [1, 1, 1]} : vector<4x8x256xf32> to vector<1x8x256xf32>
    %161 = vector.shape_cast %160 : vector<1x8x256xf32> to vector<8x256xf32>
    %162 = vector.broadcast %40 : f32 to vector<8x256xf32>
    %163 = arith.mulf %161, %162 : vector<8x256xf32>
    %164 = vector.extract_strided_slice %81 {offsets = [1, 0, 0], sizes = [1, 8, 256], strides = [1, 1, 1]} : vector<4x8x256xf32> to vector<1x8x256xf32>
    %165 = vector.shape_cast %164 : vector<1x8x256xf32> to vector<8x256xf32>
    %166 = vector.broadcast %44 : f32 to vector<8x256xf32>
    %167 = arith.mulf %165, %166 : vector<8x256xf32>
    %168 = arith.addf %163, %167 : vector<8x256xf32>
    %169 = vector.extract_strided_slice %81 {offsets = [2, 0, 0], sizes = [1, 8, 256], strides = [1, 1, 1]} : vector<4x8x256xf32> to vector<1x8x256xf32>
    %170 = vector.shape_cast %169 : vector<1x8x256xf32> to vector<8x256xf32>
    %171 = vector.broadcast %48 : f32 to vector<8x256xf32>
    %172 = arith.mulf %170, %171 : vector<8x256xf32>
    %173 = arith.addf %168, %172 : vector<8x256xf32>
    %174 = vector.extract_strided_slice %81 {offsets = [3, 0, 0], sizes = [1, 8, 256], strides = [1, 1, 1]} : vector<4x8x256xf32> to vector<1x8x256xf32>
    %175 = vector.shape_cast %174 : vector<1x8x256xf32> to vector<8x256xf32>
    %176 = vector.broadcast %52 : f32 to vector<8x256xf32>
    %177 = arith.mulf %175, %176 : vector<8x256xf32>
    %178 = arith.addf %173, %177 : vector<8x256xf32>
    %179 = vector.broadcast %82 : f32 to vector<8x256xf32>
    %180 = arith.addf %178, %179 : vector<8x256xf32>
    %181 = vector.extract_strided_slice %71 {offsets = [3, 0, 0], sizes = [1, 8, 256], strides = [1, 1, 1]} : vector<4x8x256xf32> to vector<1x8x256xf32>
    %182 = vector.shape_cast %181 : vector<1x8x256xf32> to vector<8x256xf32>
    %183 = arith.subf %180, %182 : vector<8x256xf32>
    %184 = arith.mulf %183, %183 : vector<8x256xf32>
    %185 = arith.addf %159, %184 : vector<8x256xf32>
    %186 = vector.shape_cast %185 : vector<8x256xf32> to vector<1x8x256xf32>
    %cst_58 = arith.constant dense<0.000000e+00> : vector<1xf32>
    %187 = vector.multi_reduction <add>, %186, %cst_58 [1, 2] : vector<1x8x256xf32> to vector<1xf32>
    %188 = vector.shape_cast %187 : vector<1xf32> to vector<1x1x1xf32>
    %189 = vector.extract %188[0, 0, 0] : f32 from vector<1x1x1xf32>
    %cst_59 = arith.constant 0.000000e+00 : f32
    %190 = arith.addf %cst_59, %189 : f32
    %cst_60 = arith.constant 0.000000e+00 : f32
    %191 = vector.broadcast %cst_60 : f32 to vector<8x256xf32>
    %192 = arith.select %5, %185, %191 : vector<8x256xi1>, vector<8x256xf32>
    %193 = vector.shape_cast %192 : vector<8x256xf32> to vector<1x8x256xf32>
    %cst_61 = arith.constant dense<0.000000e+00> : vector<1xf32>
    %194 = vector.multi_reduction <add>, %193, %cst_61 [1, 2] : vector<1x8x256xf32> to vector<1xf32>
    %195 = vector.shape_cast %194 : vector<1xf32> to vector<1x1x1xf32>
    %196 = vector.extract %195[0, 0, 0] : f32 from vector<1x1x1xf32>
    %cst_62 = arith.constant 0.000000e+00 : f32
    %197 = arith.addf %cst_62, %196 : f32
    %c0_63 = arith.constant 0 : index
    %c0_64 = arith.constant 0 : index
    %c0_65 = arith.constant 0 : index
    %c0_66 = arith.constant 0 : index
    %198 = vector.load %arg7[%c0_63, %c0_64, %c0_65, %c0_66] : memref<2x4x8x256xf32, #tpu.memory_space<vmem>>, vector<1x4x8x256xf32>
    %199 = vector.shape_cast %198 : vector<1x4x8x256xf32> to vector<4x8x256xf32>
    %200 = vector.extract_strided_slice %81 {offsets = [0, 0, 0], sizes = [1, 8, 256], strides = [1, 1, 1]} : vector<4x8x256xf32> to vector<1x8x256xf32>
    %201 = vector.shape_cast %200 : vector<1x8x256xf32> to vector<8x256xf32>
    %202 = vector.extract_strided_slice %199 {offsets = [0, 0, 0], sizes = [1, 8, 256], strides = [1, 1, 1]} : vector<4x8x256xf32> to vector<1x8x256xf32>
    %203 = vector.shape_cast %202 : vector<1x8x256xf32> to vector<8x256xf32>
    %204 = arith.subf %201, %203 : vector<8x256xf32>
    %205 = arith.mulf %204, %204 : vector<8x256xf32>
    %206 = vector.extract_strided_slice %81 {offsets = [1, 0, 0], sizes = [1, 8, 256], strides = [1, 1, 1]} : vector<4x8x256xf32> to vector<1x8x256xf32>
    %207 = vector.shape_cast %206 : vector<1x8x256xf32> to vector<8x256xf32>
    %208 = vector.extract_strided_slice %199 {offsets = [1, 0, 0], sizes = [1, 8, 256], strides = [1, 1, 1]} : vector<4x8x256xf32> to vector<1x8x256xf32>
    %209 = vector.shape_cast %208 : vector<1x8x256xf32> to vector<8x256xf32>
    %210 = arith.subf %207, %209 : vector<8x256xf32>
    %211 = arith.mulf %210, %210 : vector<8x256xf32>
    %212 = arith.addf %205, %211 : vector<8x256xf32>
    %213 = vector.extract_strided_slice %81 {offsets = [2, 0, 0], sizes = [1, 8, 256], strides = [1, 1, 1]} : vector<4x8x256xf32> to vector<1x8x256xf32>
    %214 = vector.shape_cast %213 : vector<1x8x256xf32> to vector<8x256xf32>
    %215 = vector.extract_strided_slice %199 {offsets = [2, 0, 0], sizes = [1, 8, 256], strides = [1, 1, 1]} : vector<4x8x256xf32> to vector<1x8x256xf32>
    %216 = vector.shape_cast %215 : vector<1x8x256xf32> to vector<8x256xf32>
    %217 = arith.subf %214, %216 : vector<8x256xf32>
    %218 = arith.mulf %217, %217 : vector<8x256xf32>
    %219 = arith.addf %212, %218 : vector<8x256xf32>
    %220 = vector.extract_strided_slice %81 {offsets = [3, 0, 0], sizes = [1, 8, 256], strides = [1, 1, 1]} : vector<4x8x256xf32> to vector<1x8x256xf32>
    %221 = vector.shape_cast %220 : vector<1x8x256xf32> to vector<8x256xf32>
    %222 = vector.extract_strided_slice %199 {offsets = [3, 0, 0], sizes = [1, 8, 256], strides = [1, 1, 1]} : vector<4x8x256xf32> to vector<1x8x256xf32>
    %223 = vector.shape_cast %222 : vector<1x8x256xf32> to vector<8x256xf32>
    %224 = arith.subf %221, %223 : vector<8x256xf32>
    %225 = arith.mulf %224, %224 : vector<8x256xf32>
    %226 = arith.addf %219, %225 : vector<8x256xf32>
    %227 = arith.mulf %36, %226 : vector<8x256xf32>
    %228 = vector.shape_cast %227 : vector<8x256xf32> to vector<1x8x256xf32>
    %cst_67 = arith.constant dense<0.000000e+00> : vector<1xf32>
    %229 = vector.multi_reduction <add>, %228, %cst_67 [1, 2] : vector<1x8x256xf32> to vector<1xf32>
    %230 = vector.shape_cast %229 : vector<1xf32> to vector<1x1x1xf32>
    %231 = vector.extract %230[0, 0, 0] : f32 from vector<1x1x1xf32>
    %cst_68 = arith.constant 0.000000e+00 : f32
    %232 = arith.addf %cst_68, %231 : f32
    %233 = vector.extract_strided_slice %81 {offsets = [0, 1, 0], sizes = [4, 7, 256], strides = [1, 1, 1]} : vector<4x8x256xf32> to vector<4x7x256xf32>
    %234 = vector.extract_strided_slice %81 {offsets = [0, 0, 0], sizes = [4, 7, 256], strides = [1, 1, 1]} : vector<4x8x256xf32> to vector<4x7x256xf32>
    %235 = arith.subf %233, %234 : vector<4x7x256xf32>
    %236 = arith.mulf %235, %235 : vector<4x7x256xf32>
    %237 = vector.shape_cast %236 : vector<4x7x256xf32> to vector<1x4x7x256xf32>
    %cst_69 = arith.constant dense<0.000000e+00> : vector<1xf32>
    %238 = vector.multi_reduction <add>, %237, %cst_69 [1, 2, 3] : vector<1x4x7x256xf32> to vector<1xf32>
    %239 = vector.shape_cast %238 : vector<1xf32> to vector<1x1x1x1xf32>
    %240 = vector.extract %239[0, 0, 0, 0] : f32 from vector<1x1x1x1xf32>
    %cst_70 = arith.constant 0.000000e+00 : f32
    %241 = arith.addf %cst_70, %240 : f32
    %c1_71 = arith.constant 1 : index
    %242 = memref.load %arg1[%c1_71] : memref<2xf32, #tpu.memory_space<smem>>
    %c1_72 = arith.constant 1 : index
    %c0_73 = arith.constant 0 : index
    %c0_74 = arith.constant 0 : index
    %c0_75 = arith.constant 0 : index
    %243 = vector.load %arg3[%c1_72, %c0_73, %c0_74, %c0_75] : memref<2x4x8x256xf32, #tpu.memory_space<vmem>>, vector<1x4x8x256xf32>
    %244 = vector.shape_cast %243 : vector<1x4x8x256xf32> to vector<4x8x256xf32>
    %c1_76 = arith.constant 1 : index
    %c0_77 = arith.constant 0 : index
    %c0_78 = arith.constant 0 : index
    %c0_79 = arith.constant 0 : index
    %245 = vector.load %arg4[%c1_76, %c0_77, %c0_78, %c0_79] : memref<2x4x8x256xf32, #tpu.memory_space<vmem>>, vector<1x4x8x256xf32>
    %246 = vector.shape_cast %245 : vector<1x4x8x256xf32> to vector<4x8x256xf32>
    %c1_80 = arith.constant 1 : index
    %c0_81 = arith.constant 0 : index
    %c0_82 = arith.constant 0 : index
    %c0_83 = arith.constant 0 : index
    %247 = vector.load %arg5[%c1_80, %c0_81, %c0_82, %c0_83] : memref<2x4x1x256xf32, #tpu.memory_space<vmem>>, vector<1x4x1x256xf32>
    %248 = vector.shape_cast %247 : vector<1x4x1x256xf32> to vector<4x1x256xf32>
    %c1_84 = arith.constant 1 : index
    %c0_85 = arith.constant 0 : index
    %c0_86 = arith.constant 0 : index
    %c0_87 = arith.constant 0 : index
    %249 = vector.load %arg6[%c1_84, %c0_85, %c0_86, %c0_87] : memref<2x4x1x256xf32, #tpu.memory_space<vmem>>, vector<1x4x1x256xf32>
    %250 = vector.shape_cast %249 : vector<1x4x1x256xf32> to vector<4x1x256xf32>
    %251 = vector.broadcast %242 : f32 to vector<4x8x256xf32>
    %252 = arith.mulf %251, %246 : vector<4x8x256xf32>
    %cst_88 = arith.constant 0.999989986 : f32
    %253 = arith.mulf %cst_88, %242 : f32
    %cst_89 = arith.constant 1.000000e+00 : f32
    %254 = arith.subf %cst_89, %253 : f32
    %255 = vector.broadcast %254 : f32 to vector<4x8x256xf32>
    %256 = arith.mulf %255, %244 : vector<4x8x256xf32>
    %257 = arith.addf %252, %256 : vector<4x8x256xf32>
    %cst_90 = arith.constant 0.999989986 : f32
    %258 = vector.broadcast %cst_90 : f32 to vector<4x8x256xf32>
    %259 = arith.mulf %258, %244 : vector<4x8x256xf32>
    %260 = arith.subf %246, %259 : vector<4x8x256xf32>
    %261 = vector.shape_cast %2 : vector<8x256xi1> to vector<1x8x256xi1>
    %262 = vector.broadcast %261 : vector<1x8x256xi1> to vector<4x8x256xi1>
    %263 = vector.shape_cast %248 : vector<4x1x256xf32> to vector<4x1x256xf32>
    %264 = vector.broadcast %263 : vector<4x1x256xf32> to vector<4x8x256xf32>
    %265 = arith.select %262, %264, %257 : vector<4x8x256xi1>, vector<4x8x256xf32>
    %266 = vector.shape_cast %4 : vector<8x256xi1> to vector<1x8x256xi1>
    %267 = vector.broadcast %266 : vector<1x8x256xi1> to vector<4x8x256xi1>
    %268 = vector.shape_cast %250 : vector<4x1x256xf32> to vector<4x1x256xf32>
    %269 = vector.broadcast %268 : vector<4x1x256xf32> to vector<4x8x256xf32>
    %270 = arith.select %267, %269, %265 : vector<4x8x256xi1>, vector<4x8x256xf32>
    %cst_91 = arith.constant 1.000000e-01 : f32
    %271 = arith.mulf %cst_91, %242 : f32
    %272 = vector.extract_strided_slice %270 {offsets = [0, 0, 0], sizes = [1, 8, 256], strides = [1, 1, 1]} : vector<4x8x256xf32> to vector<1x8x256xf32>
    %273 = vector.shape_cast %272 : vector<1x8x256xf32> to vector<8x256xf32>
    %274 = vector.broadcast %37 : f32 to vector<8x256xf32>
    %275 = arith.mulf %273, %274 : vector<8x256xf32>
    %276 = vector.extract_strided_slice %270 {offsets = [1, 0, 0], sizes = [1, 8, 256], strides = [1, 1, 1]} : vector<4x8x256xf32> to vector<1x8x256xf32>
    %277 = vector.shape_cast %276 : vector<1x8x256xf32> to vector<8x256xf32>
    %278 = vector.broadcast %41 : f32 to vector<8x256xf32>
    %279 = arith.mulf %277, %278 : vector<8x256xf32>
    %280 = arith.addf %275, %279 : vector<8x256xf32>
    %281 = vector.extract_strided_slice %270 {offsets = [2, 0, 0], sizes = [1, 8, 256], strides = [1, 1, 1]} : vector<4x8x256xf32> to vector<1x8x256xf32>
    %282 = vector.shape_cast %281 : vector<1x8x256xf32> to vector<8x256xf32>
    %283 = vector.broadcast %45 : f32 to vector<8x256xf32>
    %284 = arith.mulf %282, %283 : vector<8x256xf32>
    %285 = arith.addf %280, %284 : vector<8x256xf32>
    %286 = vector.extract_strided_slice %270 {offsets = [3, 0, 0], sizes = [1, 8, 256], strides = [1, 1, 1]} : vector<4x8x256xf32> to vector<1x8x256xf32>
    %287 = vector.shape_cast %286 : vector<1x8x256xf32> to vector<8x256xf32>
    %288 = vector.broadcast %49 : f32 to vector<8x256xf32>
    %289 = arith.mulf %287, %288 : vector<8x256xf32>
    %290 = arith.addf %285, %289 : vector<8x256xf32>
    %291 = vector.broadcast %271 : f32 to vector<8x256xf32>
    %292 = arith.addf %290, %291 : vector<8x256xf32>
    %293 = vector.extract_strided_slice %260 {offsets = [0, 0, 0], sizes = [1, 8, 256], strides = [1, 1, 1]} : vector<4x8x256xf32> to vector<1x8x256xf32>
    %294 = vector.shape_cast %293 : vector<1x8x256xf32> to vector<8x256xf32>
    %295 = arith.subf %292, %294 : vector<8x256xf32>
    %296 = arith.mulf %295, %295 : vector<8x256xf32>
    %297 = vector.extract_strided_slice %270 {offsets = [0, 0, 0], sizes = [1, 8, 256], strides = [1, 1, 1]} : vector<4x8x256xf32> to vector<1x8x256xf32>
    %298 = vector.shape_cast %297 : vector<1x8x256xf32> to vector<8x256xf32>
    %299 = vector.broadcast %38 : f32 to vector<8x256xf32>
    %300 = arith.mulf %298, %299 : vector<8x256xf32>
    %301 = vector.extract_strided_slice %270 {offsets = [1, 0, 0], sizes = [1, 8, 256], strides = [1, 1, 1]} : vector<4x8x256xf32> to vector<1x8x256xf32>
    %302 = vector.shape_cast %301 : vector<1x8x256xf32> to vector<8x256xf32>
    %303 = vector.broadcast %42 : f32 to vector<8x256xf32>
    %304 = arith.mulf %302, %303 : vector<8x256xf32>
    %305 = arith.addf %300, %304 : vector<8x256xf32>
    %306 = vector.extract_strided_slice %270 {offsets = [2, 0, 0], sizes = [1, 8, 256], strides = [1, 1, 1]} : vector<4x8x256xf32> to vector<1x8x256xf32>
    %307 = vector.shape_cast %306 : vector<1x8x256xf32> to vector<8x256xf32>
    %308 = vector.broadcast %46 : f32 to vector<8x256xf32>
    %309 = arith.mulf %307, %308 : vector<8x256xf32>
    %310 = arith.addf %305, %309 : vector<8x256xf32>
    %311 = vector.extract_strided_slice %270 {offsets = [3, 0, 0], sizes = [1, 8, 256], strides = [1, 1, 1]} : vector<4x8x256xf32> to vector<1x8x256xf32>
    %312 = vector.shape_cast %311 : vector<1x8x256xf32> to vector<8x256xf32>
    %313 = vector.broadcast %50 : f32 to vector<8x256xf32>
    %314 = arith.mulf %312, %313 : vector<8x256xf32>
    %315 = arith.addf %310, %314 : vector<8x256xf32>
    %316 = vector.broadcast %271 : f32 to vector<8x256xf32>
    %317 = arith.addf %315, %316 : vector<8x256xf32>
    %318 = vector.extract_strided_slice %260 {offsets = [1, 0, 0], sizes = [1, 8, 256], strides = [1, 1, 1]} : vector<4x8x256xf32> to vector<1x8x256xf32>
    %319 = vector.shape_cast %318 : vector<1x8x256xf32> to vector<8x256xf32>
    %320 = arith.subf %317, %319 : vector<8x256xf32>
    %321 = arith.mulf %320, %320 : vector<8x256xf32>
    %322 = arith.addf %296, %321 : vector<8x256xf32>
    %323 = vector.extract_strided_slice %270 {offsets = [0, 0, 0], sizes = [1, 8, 256], strides = [1, 1, 1]} : vector<4x8x256xf32> to vector<1x8x256xf32>
    %324 = vector.shape_cast %323 : vector<1x8x256xf32> to vector<8x256xf32>
    %325 = vector.broadcast %39 : f32 to vector<8x256xf32>
    %326 = arith.mulf %324, %325 : vector<8x256xf32>
    %327 = vector.extract_strided_slice %270 {offsets = [1, 0, 0], sizes = [1, 8, 256], strides = [1, 1, 1]} : vector<4x8x256xf32> to vector<1x8x256xf32>
    %328 = vector.shape_cast %327 : vector<1x8x256xf32> to vector<8x256xf32>
    %329 = vector.broadcast %43 : f32 to vector<8x256xf32>
    %330 = arith.mulf %328, %329 : vector<8x256xf32>
    %331 = arith.addf %326, %330 : vector<8x256xf32>
    %332 = vector.extract_strided_slice %270 {offsets = [2, 0, 0], sizes = [1, 8, 256], strides = [1, 1, 1]} : vector<4x8x256xf32> to vector<1x8x256xf32>
    %333 = vector.shape_cast %332 : vector<1x8x256xf32> to vector<8x256xf32>
    %334 = vector.broadcast %47 : f32 to vector<8x256xf32>
    %335 = arith.mulf %333, %334 : vector<8x256xf32>
    %336 = arith.addf %331, %335 : vector<8x256xf32>
    %337 = vector.extract_strided_slice %270 {offsets = [3, 0, 0], sizes = [1, 8, 256], strides = [1, 1, 1]} : vector<4x8x256xf32> to vector<1x8x256xf32>
    %338 = vector.shape_cast %337 : vector<1x8x256xf32> to vector<8x256xf32>
    %339 = vector.broadcast %51 : f32 to vector<8x256xf32>
    %340 = arith.mulf %338, %339 : vector<8x256xf32>
    %341 = arith.addf %336, %340 : vector<8x256xf32>
    %342 = vector.broadcast %271 : f32 to vector<8x256xf32>
    %343 = arith.addf %341, %342 : vector<8x256xf32>
    %344 = vector.extract_strided_slice %260 {offsets = [2, 0, 0], sizes = [1, 8, 256], strides = [1, 1, 1]} : vector<4x8x256xf32> to vector<1x8x256xf32>
    %345 = vector.shape_cast %344 : vector<1x8x256xf32> to vector<8x256xf32>
    %346 = arith.subf %343, %345 : vector<8x256xf32>
    %347 = arith.mulf %346, %346 : vector<8x256xf32>
    %348 = arith.addf %322, %347 : vector<8x256xf32>
    %349 = vector.extract_strided_slice %270 {offsets = [0, 0, 0], sizes = [1, 8, 256], strides = [1, 1, 1]} : vector<4x8x256xf32> to vector<1x8x256xf32>
    %350 = vector.shape_cast %349 : vector<1x8x256xf32> to vector<8x256xf32>
    %351 = vector.broadcast %40 : f32 to vector<8x256xf32>
    %352 = arith.mulf %350, %351 : vector<8x256xf32>
    %353 = vector.extract_strided_slice %270 {offsets = [1, 0, 0], sizes = [1, 8, 256], strides = [1, 1, 1]} : vector<4x8x256xf32> to vector<1x8x256xf32>
    %354 = vector.shape_cast %353 : vector<1x8x256xf32> to vector<8x256xf32>
    %355 = vector.broadcast %44 : f32 to vector<8x256xf32>
    %356 = arith.mulf %354, %355 : vector<8x256xf32>
    %357 = arith.addf %352, %356 : vector<8x256xf32>
    %358 = vector.extract_strided_slice %270 {offsets = [2, 0, 0], sizes = [1, 8, 256], strides = [1, 1, 1]} : vector<4x8x256xf32> to vector<1x8x256xf32>
    %359 = vector.shape_cast %358 : vector<1x8x256xf32> to vector<8x256xf32>
    %360 = vector.broadcast %48 : f32 to vector<8x256xf32>
    %361 = arith.mulf %359, %360 : vector<8x256xf32>
    %362 = arith.addf %357, %361 : vector<8x256xf32>
    %363 = vector.extract_strided_slice %270 {offsets = [3, 0, 0], sizes = [1, 8, 256], strides = [1, 1, 1]} : vector<4x8x256xf32> to vector<1x8x256xf32>
    %364 = vector.shape_cast %363 : vector<1x8x256xf32> to vector<8x256xf32>
    %365 = vector.broadcast %52 : f32 to vector<8x256xf32>
    %366 = arith.mulf %364, %365 : vector<8x256xf32>
    %367 = arith.addf %362, %366 : vector<8x256xf32>
    %368 = vector.broadcast %271 : f32 to vector<8x256xf32>
    %369 = arith.addf %367, %368 : vector<8x256xf32>
    %370 = vector.extract_strided_slice %260 {offsets = [3, 0, 0], sizes = [1, 8, 256], strides = [1, 1, 1]} : vector<4x8x256xf32> to vector<1x8x256xf32>
    %371 = vector.shape_cast %370 : vector<1x8x256xf32> to vector<8x256xf32>
    %372 = arith.subf %369, %371 : vector<8x256xf32>
    %373 = arith.mulf %372, %372 : vector<8x256xf32>
    %374 = arith.addf %348, %373 : vector<8x256xf32>
    %375 = vector.shape_cast %374 : vector<8x256xf32> to vector<1x8x256xf32>
    %cst_92 = arith.constant dense<0.000000e+00> : vector<1xf32>
    %376 = vector.multi_reduction <add>, %375, %cst_92 [1, 2] : vector<1x8x256xf32> to vector<1xf32>
    %377 = vector.shape_cast %376 : vector<1xf32> to vector<1x1x1xf32>
    %378 = vector.extract %377[0, 0, 0] : f32 from vector<1x1x1xf32>
    %379 = arith.addf %190, %378 : f32
    %cst_93 = arith.constant 0.000000e+00 : f32
    %380 = vector.broadcast %cst_93 : f32 to vector<8x256xf32>
    %381 = arith.select %5, %374, %380 : vector<8x256xi1>, vector<8x256xf32>
    %382 = vector.shape_cast %381 : vector<8x256xf32> to vector<1x8x256xf32>
    %cst_94 = arith.constant dense<0.000000e+00> : vector<1xf32>
    %383 = vector.multi_reduction <add>, %382, %cst_94 [1, 2] : vector<1x8x256xf32> to vector<1xf32>
    %384 = vector.shape_cast %383 : vector<1xf32> to vector<1x1x1xf32>
    %385 = vector.extract %384[0, 0, 0] : f32 from vector<1x1x1xf32>
    %386 = arith.addf %197, %385 : f32
    %c1_95 = arith.constant 1 : index
    %c0_96 = arith.constant 0 : index
    %c0_97 = arith.constant 0 : index
    %c0_98 = arith.constant 0 : index
    %387 = vector.load %arg7[%c1_95, %c0_96, %c0_97, %c0_98] : memref<2x4x8x256xf32, #tpu.memory_space<vmem>>, vector<1x4x8x256xf32>
    %388 = vector.shape_cast %387 : vector<1x4x8x256xf32> to vector<4x8x256xf32>
    %389 = vector.extract_strided_slice %270 {offsets = [0, 0, 0], sizes = [1, 8, 256], strides = [1, 1, 1]} : vector<4x8x256xf32> to vector<1x8x256xf32>
    %390 = vector.shape_cast %389 : vector<1x8x256xf32> to vector<8x256xf32>
    %391 = vector.extract_strided_slice %388 {offsets = [0, 0, 0], sizes = [1, 8, 256], strides = [1, 1, 1]} : vector<4x8x256xf32> to vector<1x8x256xf32>
    %392 = vector.shape_cast %391 : vector<1x8x256xf32> to vector<8x256xf32>
    %393 = arith.subf %390, %392 : vector<8x256xf32>
    %394 = arith.mulf %393, %393 : vector<8x256xf32>
    %395 = vector.extract_strided_slice %270 {offsets = [1, 0, 0], sizes = [1, 8, 256], strides = [1, 1, 1]} : vector<4x8x256xf32> to vector<1x8x256xf32>
    %396 = vector.shape_cast %395 : vector<1x8x256xf32> to vector<8x256xf32>
    %397 = vector.extract_strided_slice %388 {offsets = [1, 0, 0], sizes = [1, 8, 256], strides = [1, 1, 1]} : vector<4x8x256xf32> to vector<1x8x256xf32>
    %398 = vector.shape_cast %397 : vector<1x8x256xf32> to vector<8x256xf32>
    %399 = arith.subf %396, %398 : vector<8x256xf32>
    %400 = arith.mulf %399, %399 : vector<8x256xf32>
    %401 = arith.addf %394, %400 : vector<8x256xf32>
    %402 = vector.extract_strided_slice %270 {offsets = [2, 0, 0], sizes = [1, 8, 256], strides = [1, 1, 1]} : vector<4x8x256xf32> to vector<1x8x256xf32>
    %403 = vector.shape_cast %402 : vector<1x8x256xf32> to vector<8x256xf32>
    %404 = vector.extract_strided_slice %388 {offsets = [2, 0, 0], sizes = [1, 8, 256], strides = [1, 1, 1]} : vector<4x8x256xf32> to vector<1x8x256xf32>
    %405 = vector.shape_cast %404 : vector<1x8x256xf32> to vector<8x256xf32>
    %406 = arith.subf %403, %405 : vector<8x256xf32>
    %407 = arith.mulf %406, %406 : vector<8x256xf32>
    %408 = arith.addf %401, %407 : vector<8x256xf32>
    %409 = vector.extract_strided_slice %270 {offsets = [3, 0, 0], sizes = [1, 8, 256], strides = [1, 1, 1]} : vector<4x8x256xf32> to vector<1x8x256xf32>
    %410 = vector.shape_cast %409 : vector<1x8x256xf32> to vector<8x256xf32>
    %411 = vector.extract_strided_slice %388 {offsets = [3, 0, 0], sizes = [1, 8, 256], strides = [1, 1, 1]} : vector<4x8x256xf32> to vector<1x8x256xf32>
    %412 = vector.shape_cast %411 : vector<1x8x256xf32> to vector<8x256xf32>
    %413 = arith.subf %410, %412 : vector<8x256xf32>
    %414 = arith.mulf %413, %413 : vector<8x256xf32>
    %415 = arith.addf %408, %414 : vector<8x256xf32>
    %416 = arith.mulf %36, %415 : vector<8x256xf32>
    %417 = vector.shape_cast %416 : vector<8x256xf32> to vector<1x8x256xf32>
    %cst_99 = arith.constant dense<0.000000e+00> : vector<1xf32>
    %418 = vector.multi_reduction <add>, %417, %cst_99 [1, 2] : vector<1x8x256xf32> to vector<1xf32>
    %419 = vector.shape_cast %418 : vector<1xf32> to vector<1x1x1xf32>
    %420 = vector.extract %419[0, 0, 0] : f32 from vector<1x1x1xf32>
    %421 = arith.addf %232, %420 : f32
    %422 = vector.extract_strided_slice %270 {offsets = [0, 1, 0], sizes = [4, 7, 256], strides = [1, 1, 1]} : vector<4x8x256xf32> to vector<4x7x256xf32>
    %423 = vector.extract_strided_slice %270 {offsets = [0, 0, 0], sizes = [4, 7, 256], strides = [1, 1, 1]} : vector<4x8x256xf32> to vector<4x7x256xf32>
    %424 = arith.subf %422, %423 : vector<4x7x256xf32>
    %425 = arith.mulf %424, %424 : vector<4x7x256xf32>
    %426 = vector.shape_cast %425 : vector<4x7x256xf32> to vector<1x4x7x256xf32>
    %cst_100 = arith.constant dense<0.000000e+00> : vector<1xf32>
    %427 = vector.multi_reduction <add>, %426, %cst_100 [1, 2, 3] : vector<1x4x7x256xf32> to vector<1xf32>
    %428 = vector.shape_cast %427 : vector<1xf32> to vector<1x1x1x1xf32>
    %429 = vector.extract %428[0, 0, 0, 0] : f32 from vector<1x1x1x1xf32>
    %430 = arith.addf %241, %429 : f32
    %431 = tpu.iota {dimensions = array<i32: 1>} : vector<8x128xi32>
    %c0_i32_101 = arith.constant 0 : i32
    %432 = vector.broadcast %c0_i32_101 : i32 to vector<8x128xi32>
    %433 = arith.cmpi eq, %431, %432 : vector<8x128xi32>
    %cst_102 = arith.constant 0.000000e+00 : f32
    %434 = vector.broadcast %379 : f32 to vector<8x128xf32>
    %435 = vector.broadcast %cst_102 : f32 to vector<8x128xf32>
    %436 = arith.select %433, %434, %435 : vector<8x128xi1>, vector<8x128xf32>
    %c1_i32_103 = arith.constant 1 : i32
    %437 = vector.broadcast %c1_i32_103 : i32 to vector<8x128xi32>
    %438 = arith.cmpi eq, %431, %437 : vector<8x128xi32>
    %439 = vector.broadcast %386 : f32 to vector<8x128xf32>
    %440 = arith.select %438, %439, %436 : vector<8x128xi1>, vector<8x128xf32>
    %c2_i32_104 = arith.constant 2 : i32
    %441 = vector.broadcast %c2_i32_104 : i32 to vector<8x128xi32>
    %442 = arith.cmpi eq, %431, %441 : vector<8x128xi32>
    %443 = vector.broadcast %421 : f32 to vector<8x128xf32>
    %444 = arith.select %442, %443, %440 : vector<8x128xi1>, vector<8x128xf32>
    %c3_i32_105 = arith.constant 3 : i32
    %445 = vector.broadcast %c3_i32_105 : i32 to vector<8x128xi32>
    %446 = arith.cmpi eq, %431, %445 : vector<8x128xi32>
    %447 = vector.broadcast %430 : f32 to vector<8x128xf32>
    %448 = arith.select %446, %447, %444 : vector<8x128xi1>, vector<8x128xf32>
    %c0_106 = arith.constant 0 : index
    %c0_107 = arith.constant 0 : index
    %449 = vector.load %arg8[%c0_106, %c0_107] : memref<8x128xf32, #tpu.memory_space<vmem>>, vector<8x128xf32>
    tpu.vector_store %arg8[%c0_106, %c0_107], %448 {strides = array<i32>} : memref<8x128xf32, #tpu.memory_space<vmem>>, vector<8x128xf32>,
    return
  }
  func.func @transform_0(%arg0: i32) -> i32 {
    %c0_i32 = arith.constant 0 : i32
    %c0_i32_0 = arith.constant 0 : i32
    return %c0_i32 : i32
  }
  func.func @transform_1(%arg0: i32) -> (i32, i32) {
    %c0_i32 = arith.constant 0 : i32
    %c0_i32_0 = arith.constant 0 : i32
    %c0_i32_1 = arith.constant 0 : i32
    return %c0_i32, %c0_i32_0 : i32, i32
  }
  func.func @transform_2(%arg0: i32) -> (i32, i32, i32, i32) {
    %c0_i32 = arith.constant 0 : i32
    %c0_i32_0 = arith.constant 0 : i32
    %c0_i32_1 = arith.constant 0 : i32
    %c0_i32_2 = arith.constant 0 : i32
    %c0_i32_3 = arith.constant 0 : i32
    return %c0_i32, %c0_i32_0, %c0_i32_1, %c0_i32_2 : i32, i32, i32, i32
  }
  func.func @transform_3(%arg0: i32) -> (i32, i32, i32, i32) {
    %c0_i32 = arith.constant 0 : i32
    %c0_i32_0 = arith.constant 0 : i32
    %c0_i32_1 = arith.constant 0 : i32
    %c0_i32_2 = arith.constant 0 : i32
    %c0_i32_3 = arith.constant 0 : i32
    return %c0_i32, %c0_i32_0, %c0_i32_1, %c0_i32_2 : i32, i32, i32, i32
  }
  func.func @transform_4(%arg0: i32) -> (i32, i32, i32, i32) {
    %c0_i32 = arith.constant 0 : i32
    %c0_i32_0 = arith.constant 0 : i32
    %c0_i32_1 = arith.constant 0 : i32
    %c0_i32_2 = arith.constant 0 : i32
    %c0_i32_3 = arith.constant 0 : i32
    return %c0_i32, %c0_i32_0, %c0_i32_1, %c0_i32_2 : i32, i32, i32, i32
  }
  func.func @transform_5(%arg0: i32) -> (i32, i32, i32, i32) {
    %c0_i32 = arith.constant 0 : i32
    %c0_i32_0 = arith.constant 0 : i32
    %c0_i32_1 = arith.constant 0 : i32
    %c0_i32_2 = arith.constant 0 : i32
    %c0_i32_3 = arith.constant 0 : i32
    return %c0_i32, %c0_i32_0, %c0_i32_1, %c0_i32_2 : i32, i32, i32, i32
  }
  func.func @transform_6(%arg0: i32) -> (i32, i32, i32, i32) {
    %c0_i32 = arith.constant 0 : i32
    %c0_i32_0 = arith.constant 0 : i32
    %c0_i32_1 = arith.constant 0 : i32
    %c0_i32_2 = arith.constant 0 : i32
    %c0_i32_3 = arith.constant 0 : i32
    return %c0_i32, %c0_i32_0, %c0_i32_1, %c0_i32_2 : i32, i32, i32, i32
  }
  func.func @transform_7(%arg0: i32) -> (i32, i32) {
    %c0_i32 = arith.constant 0 : i32
    %c0_i32_0 = arith.constant 0 : i32
    %c0_i32_1 = arith.constant 0 : i32
    return %c0_i32, %c0_i32_0 : i32, i32
  }
}

</mosaic_0001>

<bundles_post_ra>
// kernel: tpu_custom_call.1
= control target key start
LH: loop header
LB: loop body
LE: loop exit
PB: predicated region body
PF: predicated region fallthrough
CT: control target
= control target key end

     0   :  { %12 = vsyncpa [#allocation5], 0  ;;  %s1935_s0 = inlined_call_operand.hbm [shape: f32[2], index: 0, kind: input, shape index: {}]   ;;  %s1936_s1 = inlined_call_operand.hbm [shape: f32[4,4], index: 1, kind: input, shape index: {}]   ;;  %s1937_s2 = inlined_call_operand.hbm [shape: f32[2,4,8,256], index: 2, kind: input, shape index: {}]   ;;  %s1938_s3 = inlined_call_operand.hbm [shape: f32[2,4,8,256], index: 3, kind: input, shape index: {}]   ;;  %s1939_s4 = inlined_call_operand.hbm [shape: f32[2,4,1,256], index: 4, kind: input, shape index: {}]   ;;  %s1940_s5 = inlined_call_operand.hbm [shape: f32[2,4,1,256], index: 5, kind: input, shape index: {}]   ;;  %s1941_s6 = inlined_call_operand.hbm [shape: f32[2,4,8,256], index: 6, kind: input, shape index: {}]   ;;  %s1942_s7 = inlined_call_operand.hbm [shape: f32[8,128], index: 7, kind: output, shape index: {}]  }
   0x1   :  { %13 = vsyncpa [#allocation7], 0 }
   0x2   :  { %14 = vsyncpa [#allocation3], 0 }
   0x3   :  { %15 = vsyncpa [#allocation10], 0 }
   0x4   :  { %16 = vsyncpa [#allocation13], 0 }
   0x5   :  { %17 = vsyncpa [#allocation4], 0  ;;  %s53_s26 = sshll.u32 %s1938_s3, 4  ;;  %s1189_s27 = smov [#allocation9]   ;;  %s54_s26 = int_to_ptr.hbm [resolvable:$true] %s53_s26 }
   0x6   :  { %s55_s28 = sshll.u32 %s1189_s27, 4  ;;  %s1190_s29 = smov 256   ;;  %s56_s28 = int_to_ptr.vmem [resolvable:$true] %s55_s28 }
   0x7   :  { %s1191_s30 = smov 16   ;;  %s79_s10 = sshll.u32 %s1940_s5, 4  ;;  %s80_s10 = int_to_ptr.hbm [resolvable:$true] %s79_s10 }
   0x8   :  { %61 = dma.hbm_to_vmem [thread:$0]  %s54_s26, 2048, %s56_s28, [#allocation10], %s1190_s29, %s1190_s29, %s1191_s30  }
   0x9   :  { %s1192_s11 = smov [#allocation12]   ;;  %s23_s3 = sshll.u32 %s1935_s0, 4  ;;  %s24_s3 = int_to_ptr.hbm [resolvable:$true] %s23_s3 }
   0xa   :  { %s81_s12 = sshll.u32 %s1192_s11, 4  ;;  %s1193_s15 = smov 32   ;;  %s82_s12 = int_to_ptr.vmem [resolvable:$true] %s81_s12 }
   0xb   :  { %s1194_s16 = smov 2   ;;  %s32_s19 = sshll.u32 %s1936_s1, 4  ;;  %s33_s19 = int_to_ptr.hbm [resolvable:$true] %s32_s19 }
   0xc   :  { %87 = dma.hbm_to_vmem [thread:$0]  %s80_s10, 256, %s82_s12, [#allocation13], %s1193_s15, %s1193_s15, %s1194_s16  }
   0xd   :  { %s1195_s20 = smov [#allocation2]   ;;  %s1196_s5 = smov [#allocation6]  }
   0xe   :  { %26 = dma.hbm_to_smem %s24_s3, 16, %s1195_s20, [#allocation5]  }
   0xf   :  { %35 = dma.hbm_to_smem %s33_s19, 64, %s1196_s5, [#allocation7]  }
  0x10   :  { %s40_s23 = sshll.u32 %s1937_s2, 4  ;;  %s1197_s0 = smov [#allocation8]   ;;  %s41_s23 = int_to_ptr.hbm [resolvable:$true] %s40_s23 }
  0x11   :  { %s42_s24 = sshll.u32 %s1197_s0, 4  ;;  %s66_s27 = sshll.u32 %s1939_s4, 4  ;;  %s43_s24 = int_to_ptr.vmem [resolvable:$true] %s42_s24  ;;  %s67_s27 = int_to_ptr.hbm [resolvable:$true] %s66_s27 }
  0x12   :  { %48 = dma.hbm_to_vmem [thread:$0]  %s41_s23, 2048, %s43_s24, [#allocation3], %s1190_s29, %s1190_s29, %s1191_s30  }
  0x13   :  { %s1198_s1 = smov [#allocation11]   ;;  %s92_s10 = sshll.u32 %s1941_s6, 4  ;;  %s93_s10 = int_to_ptr.hbm [resolvable:$true] %s92_s10 }
  0x14   :  { %s68_s28 = sshll.u32 %s1198_s1, 4  ;;  %s1199_s2 = smov [#allocation14]   ;;  %s69_s28 = int_to_ptr.vmem [resolvable:$true] %s68_s28 }
  0x15   :  { %74 = dma.hbm_to_vmem [thread:$0]  %s67_s27, 256, %s69_s28, [#allocation10], %s1193_s15, %s1193_s15, %s1194_s16  }
  0x16   :  { %s94_s11 = sshll.u32 %s1199_s2, 4  ;;  %s95_s11 = int_to_ptr.vmem [resolvable:$true] %s94_s11 }
  0x17   :  { %100 = dma.hbm_to_vmem [thread:$0]  %s93_s10, 2048, %s95_s11, [#allocation13], %s1190_s29, %s1190_s29, %s1191_s30  }
  0x18   :  { %1177 = dma.done.wait [#allocation5], 16  }
  0x19   :  { %1178 = vsyncadd [#allocation5], 4294967280 }
  0x1a   :  { %1179 = dma.done.wait [#allocation7], 64  }
  0x1b   :  { %1180 = vsyncadd [#allocation7], 4294967232 }
  0x1c   :  { %1181 = dma.done.wait [#allocation3], 2048  }
  0x1d   :  { %1182 = vsyncadd [#allocation3], 4294965248 }
  0x1e   :  { %1183 = dma.done.wait [#allocation10], 2304  }
  0x1f   :  { %1184 = vsyncadd [#allocation10], 4294964992 }
  0x20   :  { %1185 = dma.done.wait [#allocation13], 2304  }
  0x21   :  { %1186 = vsyncadd [#allocation13], 4294964992 }
  0x22   :  { %129 = sfence }
  0x23   :  { %v1943_v0 = vlaneseq  ;;  %s1272_s4 = sld [smem:[#allocation2]]  ;;  %v1279_v2 = vld [vmem:[#allocation9] sm:$0xff]  ;;  %v1281_v3 = vld [vmem:[#allocation9 + $0x8] sm:$0xff]  ;;  %v1283_v4 = vld [vmem:[#allocation9 + $0x10] sm:$0xff]  ;;  %v1200_v8 = vmov 0.0   ;;  %vm528_vm9 = vcmask 1046528  }
  0x24   :  { %s1277_s6 = sld [smem:[#allocation6]]  ;;  %1992 = vst [vmem:[#allocation22_spill] sm:$0xff] %v1279_v2  ;;  %v1290_v5 = vld [vmem:[#allocation9 + $0x18] sm:$0xff]  ;;  %v1292_v6 = vld [vmem:[#allocation9 + $0x20] sm:$0xff]  ;;  %v1294_v7 = vld [vmem:[#allocation9 + $0x28] sm:$0xff] }
  0x25   :  { %v1275_v1 = vshrl.u32 %v1943_v0, 7  ;;  %1993 = vst [vmem:[#allocation23_spill] sm:$0xff] %v1281_v3  ;;  %s1285_s29 = sld [smem:[#allocation6 + $0x1]]  ;;  %v1299_v10 = vld [vmem:[#allocation9 + $0x30] sm:$0xff]  ;;  %v1301_v11 = vld [vmem:[#allocation9 + $0x38] sm:$0xff]  ;;  %v1337_v35 = vld [vmem:[#allocation8] sm:$0xff] }
  0x26   :  { %1994 = vst [vmem:[#allocation24_spill] sm:$0xff] %v1283_v4  ;;  %v1304_v13 = vld [vmem:[#allocation11] sm:$0x3]  ;;  %v1306_v14 = vld [vmem:[#allocation11 + $0x2] sm:$0x3]  ;;  %v1339_v36 = vld [vmem:[#allocation8 + $0x8] sm:$0xff] }
  0x27   :  { %vm133_vm0 = vcmp.eq.s32.totalorder %v1275_v1, 7  ;;  %vm135_vm1 = vcmp.eq.s32.totalorder %v1275_v1, 1  ;;  %vm137_vm2 = vcmp.eq.s32.totalorder %v1275_v1, 2  ;;  %1995 = vst [vmem:[#allocation25_spill] sm:$0xff] %v1290_v5  ;;  %vm139_vm3 = vcmp.eq.s32.totalorder %v1275_v1, 3  ;;  %v1341_v37 = vld [vmem:[#allocation8 + $0x10] sm:$0xff] }
  0x28   :  { %1996 = vst [vmem:[#allocation26_spill] sm:$0xff] %v1292_v6  ;;  %v136_v9 = vsel %vm135_vm1, 1.0, %v1200_v8  ;;  %vm141_vm4 = vcmp.eq.s32.totalorder %v1275_v1, 4  ;;  %vm143_vm5 = vcmp.eq.s32.totalorder %v1275_v1, 5  ;;  %vm145_vm6 = vcmp.eq.s32.totalorder %v1275_v1, 6  ;;  %v1343_v38 = vld [vmem:[#allocation8 + $0x18] sm:$0xff] }
  0x29   :  { %1997 = vst [vmem:[#allocation27_spill] sm:$0xff] %v1294_v7  ;;  %v138_v12 = vsel %vm137_vm2, 1.0, %v136_v9  ;;  %v189_v15 = vstv %s1272_s4  ;;  %v1309_v17 = vld [vmem:[#allocation11 + $0x4] sm:$0x3]  ;;  %v1311_v18 = vld [vmem:[#allocation11 + $0x6] sm:$0x3] }
  0x2a   :  { %1998 = vst [vmem:[#allocation28_spill] sm:$0xff] %v1299_v10  ;;  %v140_v16 = vsel %vm139_vm3, 1.0, %v138_v12  ;;  %v190_v19 = vmul.f32 %v189_v15, %v1279_v2  ;;  %v191_v20 = vmul.f32 %v189_v15, %v1281_v3  ;;  %v192_v21 = vmul.f32 %v189_v15, %v1283_v4  ;;  %v1319_v23 = vld [vmem:[#allocation12] sm:$0x3]  ;;  %v1321_v24 = vld [vmem:[#allocation12 + $0x2] sm:$0x3] }
  0x2b   :  { %1999 = vst [vmem:[#allocation29_spill] sm:$0xff] %v1301_v11  ;;  %vm132_vm7 = vcmp.eq.s32.totalorder %v1275_v1, 0  ;;  %v142_v22 = vsel %vm141_vm4, 1.0, %v140_v16  ;;  %v193_v25 = vmul.f32 %v189_v15, %v1290_v5  ;;  %v194_v26 = vmul.f32 %v189_v15, %v1292_v6  ;;  %v1328_v29 = vld [vmem:[#allocation12 + $0x4] sm:$0x3]  ;;  %v1353_v43 = vld [vmem:[#allocation8 + $0x20] sm:$0xff] }
  0x2c   :  { %v195_v27 = vmul.f32 %v189_v15, %v1294_v7  ;;  %v144_v28 = vsel %vm143_vm5, 1.0, %v142_v22  ;;  %v1330_v30 = vld [vmem:[#allocation12 + $0x6] sm:$0x3]  ;;  %v196_v31 = vmul.f32 %v189_v15, %v1299_v10  ;;  %v197_v32 = vmul.f32 %v189_v15, %v1301_v11  ;;  %2000 = vst [vmem:[#allocation30_spill] sm:$0xff] %v1337_v35  ;;  %s198_s30 = smul.f32 0.99999, %s1272_s4  ;;  %vm1875_vm8 = vmor %vm132_vm7, %vm133_vm0 }
  0x2d   :  { %v239_v33 = vperm.slane %v1304_v13, 0  ;;  %v146_v34 = vsel %vm145_vm6, 1.0, %v144_v28  ;;  %2001 = vst [vmem:[#allocation31_spill] sm:$0xff] %v1339_v36  ;;  %v240_v39 = vperm.slane %v1304_v13, 1  ;;  %v241_v40 = vperm.slane %v1306_v14, 0  ;;  %v1355_v44 = vld [vmem:[#allocation8 + $0x28] sm:$0xff] }
  0x2e   :  { %2002 = vst [vmem:[#allocation32_spill] sm:$0xff] %v1341_v37  ;;  %v242_v41 = vperm.slane %v1306_v14, 1  ;;  %v1351_v42 = vsel %vm133_vm0, 0.0, %v146_v34  ;;  %v1357_v45 = vld [vmem:[#allocation8 + $0x30] sm:$0xff]  ;;  %v243_v46 = vperm.slane %v1309_v17, 0  ;;  %v244_v47 = vperm.slane %v1309_v17, 1 }
  0x2f   :  { %2003 = vst [vmem:[#allocation33_spill] sm:$0xff] %v1343_v38  ;;  %v245_v48 = vperm.slane %v1311_v18, 0  ;;  %v1362_v49 = vld [vmem:[#allocation8 + $0x38] sm:$0xff]  ;;  %s199_s12 = ssub.f32 1.0, %s198_s30  ;;  %v246_v50 = vperm.slane %v1311_v18, 1  ;;  %v269_v51 = vperm.slane %v1319_v23, 0  ;;  %v1378_v60 = vstv %s1277_s6 }
  0x30   :  { %2004 = vst [vmem:[#allocation34_spill] sm:$0xff] %v1351_v42  ;;  %v270_v52 = vperm.slane %v1319_v23, 1  ;;  %v271_v53 = vperm.slane %v1321_v24, 0  ;;  %v272_v54 = vperm.slane %v1321_v24, 1  ;;  %v273_v55 = vperm.slane %v1328_v29, 0  ;;  %s1372_s13 = sld [smem:[#allocation6 + $0x2]] }
  0x31   :  { %2005 = vst [vmem:[#allocation35_spill] sm:$0xff] %v1353_v43  ;;  %v274_v56 = vperm.slane %v1328_v29, 1  ;;  %v275_v57 = vperm.slane %v1330_v30, 0  ;;  %v200_v58 = vstv %s199_s12  ;;  %v276_v59 = vperm.slane %v1330_v30, 1  ;;  %s1375_s14 = sld [smem:[#allocation6 + $0x3]]  ;;  %s950_s12 = sshll.u32 %s1942_s7, 4  ;;  %s951_s12 = int_to_ptr.hbm [resolvable:$true] %s950_s12 }
  0x32   :  { %2006 = vst [vmem:[#allocation36_spill] sm:$0xff] %v1355_v44  ;;  %v1381_v61 = vstv %s1285_s29  ;;  %v201_v62 = vmul.f32 %v200_v58, %v1337_v35  ;;  %v202_v63 = vmul.f32 %v200_v58, %v1339_v36  ;;  %v203_v8 = vmul.f32 %v200_v58, %v1341_v37  ;;  %s1387_s3 = sld [smem:[#allocation6 + $0x80]]  ;;  %v574_v36 = vld [vmem:[#allocation11 + $0x8] sm:$0x3]  ;;  %s293_s1 = smul.f32 0.1, %s1272_s4 }
  0x33   :  { %2007 = vst [vmem:[#allocation37_spill] sm:$0xff] %v1357_v45  ;;  %v204_v9 = vmul.f32 %v200_v58, %v1343_v38  ;;  %v205_v12 = vmul.f32 %v200_v58, %v1353_v43  ;;  %v206_v13 = vmul.f32 %v200_v58, %v1355_v44  ;;  %v207_v14 = vmul.f32 %v200_v58, %v1357_v45  ;;  %s1393_s15 = sld [smem:[#allocation6 + $0x81]] }
  0x34   :  { %2008 = vst [vmem:[#allocation38_spill] sm:$0xff] %v1362_v49  ;;  %v208_v15 = vmul.f32 %v200_v58, %v1362_v49  ;;  %v209_v16 = vadd.f32 %v201_v62, %v190_v19  ;;  %v210_v17 = vadd.f32 %v202_v63, %v191_v20  ;;  %v211_v18 = vadd.f32 %v203_v8, %v192_v21  ;;  %s1395_s16 = sld [smem:[#allocation6 + $0x82]]  ;;  %v421_v21 = vld [vmem:[#allocation14] sm:$0xff]  ;;  %v427_v58 = vld [vmem:[#allocation14 + $0x30] sm:$0xff]  ;;  %v428_v62 = vld [vmem:[#allocation14 + $0x38] sm:$0xff] }
  0x35   :  { %v212_v22 = vadd.f32 %v204_v9, %v193_v25  ;;  %v213_v23 = vadd.f32 %v205_v12, %v194_v26  ;;  %v214_v24 = vadd.f32 %v206_v13, %v195_v27  ;;  %v215_v28 = vadd.f32 %v207_v14, %v196_v31  ;;  %s1397_s17 = sld [smem:[#allocation6 + $0x83]]  ;;  %v422_v25 = vld [vmem:[#allocation14 + $0x8] sm:$0xff] }
  0x36   :  { %v216_v29 = vadd.f32 %v208_v15, %v197_v32  ;;  %v255_v30 = vsel %vm132_vm7, %v239_v33, %v209_v16  ;;  %v256_v34 = vsel %vm132_vm7, %v240_v39, %v210_v17  ;;  %v257_v19 = vsel %vm132_vm7, %v241_v40, %v211_v18  ;;  %s1407_s18 = sld [smem:[#allocation6 + $0x100]]  ;;  %v423_v33 = vld [vmem:[#allocation14 + $0x10] sm:$0xff]  ;;  %v424_v39 = vld [vmem:[#allocation14 + $0x18] sm:$0xff]  ;;  %v425_v40 = vld [vmem:[#allocation14 + $0x20] sm:$0xff] }
  0x37   :  { %v258_v20 = vsel %vm132_vm7, %v242_v41, %v212_v22  ;;  %v259_v26 = vsel %vm132_vm7, %v243_v46, %v213_v23  ;;  %v260_v27 = vsel %vm132_vm7, %v244_v47, %v214_v24  ;;  %v261_v31 = vsel %vm132_vm7, %v245_v48, %v215_v28  ;;  %s1417_s19 = sld [smem:[#allocation6 + $0x101]] }
  0x38   :  { %v262_v32 = vsel %vm132_vm7, %v246_v50, %v216_v29  ;;  %v1421_v41 = vsel %vm133_vm0, %v269_v51, %v255_v30  ;;  %v1425_v46 = vsel %vm133_vm0, %v270_v52, %v256_v34  ;;  %v1429_v47 = vsel %vm133_vm0, %v271_v53, %v257_v19  ;;  %v426_v50 = vld [vmem:[#allocation14 + $0x28] sm:$0xff]  ;;  %s1435_s20 = sld [smem:[#allocation6 + $0x102]] }
  0x39   :  { %2009 = vst [vmem:[#allocation39_spill] sm:$0xff] %v1421_v41  ;;  %v1433_v48 = vsel %vm133_vm0, %v272_v54, %v258_v20  ;;  %v1439_v51 = vsel %vm133_vm0, %v273_v55, %v259_v26  ;;  %v1443_v52 = vsel %vm133_vm0, %v274_v56, %v260_v27  ;;  %v1447_v53 = vsel %vm133_vm0, %v275_v57, %v261_v31  ;;  %s1453_s5 = sld [smem:[#allocation6 + $0x103]] }
  0x3a   :  { %2010 = vst [vmem:[#allocation40_spill] sm:$0xff] %v1425_v46  ;;  %v1451_v54 = vsel %vm133_vm0, %v276_v59, %v262_v32  ;;  %v429_v63 = vsub.f32 %v1421_v41, %v421_v21  ;;  %v430_v8 = vsub.f32 %v1425_v46, %v422_v25  ;;  %v433_v55 = vsub.f32 %v1429_v47, %v423_v33  ;;  %s975_s21 = sld [smem:[#allocation6 + $0x180]]  ;;  %v556_v25 = vld [vmem:[#allocation8 + $0x40] sm:$0xff]  ;;  %v557_v33 = vld [vmem:[#allocation8 + $0x48] sm:$0xff]  ;;  %v562_v41 = vld [vmem:[#allocation8 + $0x70] sm:$0xff] }
  0x3b   :  { %2011 = vst [vmem:[#allocation41_spill] sm:$0xff] %v1429_v47  ;;  %v434_v9 = vsub.f32 %v1433_v48, %v424_v39  ;;  %v439_v56 = vsub.f32 %v1439_v51, %v425_v40  ;;  %v440_v57 = vsub.f32 %v1443_v52, %v426_v50  ;;  %v445_v12 = vsub.f32 %v1447_v53, %v427_v58  ;;  %s976_s22 = sld [smem:[#allocation6 + $0x181]]  ;;  %v558_v39 = vld [vmem:[#allocation8 + $0x50] sm:$0xff]  ;;  %v559_v40 = vld [vmem:[#allocation8 + $0x58] sm:$0xff]  ;;  %v1492_v50 = vld [vmem:[#allocation9 + $0x40] sm:$0xff] }
  0x3c   :  { %2012 = vst [vmem:[#allocation42_spill] sm:$0xff] %v1433_v48  ;;  %v446_v59 = vsub.f32 %v1451_v54, %v428_v62  ;;  %v431_v13 = vmul.f32 %v429_v63, %v429_v63  ;;  %v432_v14 = vmul.f32 %v430_v8, %v430_v8  ;;  %v435_v15 = vmul.f32 %v433_v55, %v433_v55  ;;  %s1463_s23 = sld [smem:[#allocation6 + $0x182]]  ;;  %v560_v55 = vld [vmem:[#allocation8 + $0x60] sm:$0xff]  ;;  %v561_v46 = vld [vmem:[#allocation8 + $0x68] sm:$0xff] }
  0x3d   :  { %2013 = vst [vmem:[#allocation43_spill] sm:$0xff] %v1439_v51  ;;  %v436_v16 = vmul.f32 %v434_v9, %v434_v9  ;;  %v441_v17 = vmul.f32 %v439_v56, %v439_v56  ;;  %v442_v18 = vmul.f32 %v440_v57, %v440_v57  ;;  %v447_v22 = vmul.f32 %v445_v12, %v445_v12  ;;  %s1465_s0 = sld [smem:[#allocation6 + $0x183]]  ;;  %v1505_v9 = vld [vmem:[#allocation9 + $0x48] sm:$0xff]  ;;  %v1507_v56 = vld [vmem:[#allocation9 + $0x50] sm:$0xff]  ;;  %v1509_v57 = vld [vmem:[#allocation9 + $0x58] sm:$0xff] }
  0x3e   :  { %2014 = vst [vmem:[#allocation44_spill] sm:$0xff] %v1443_v52  ;;  %v448_v23 = vmul.f32 %v446_v59, %v446_v59  ;;  %v437_v24 = vadd.f32 %v435_v15, %v431_v13  ;;  %v1468_v29 = vstv %s1387_s3  ;;  %v1471_v30 = vstv %s1407_s18  ;;  %s1473_s24 = sld [smem:[#allocation2 + $0x1]]  ;;  %v1516_v15 = vld [vmem:[#allocation9 + $0x68] sm:$0xff] }
  0x3f   :  { %2015 = vst [vmem:[#allocation45_spill] sm:$0xff] %v1447_v53  ;;  %v438_v28 = vadd.f32 %v436_v16, %v432_v14  ;;  %v1476_v34 = vstv %s1393_s15  ;;  %v1479_v19 = vstv %s1417_s19  ;;  %v1482_v20 = vstv %s1372_s13  ;;  %v1514_v14 = vld [vmem:[#allocation9 + $0x60] sm:$0xff]  ;;  %v1518_v16 = vld [vmem:[#allocation9 + $0x70] sm:$0xff] }
  0x40   :  { %2016 = vst [vmem:[#allocation46_spill] sm:$0xff] %v1451_v54  ;;  %v1485_v21 = vstv %s1395_s16  ;;  %v443_v26 = vadd.f32 %v441_v17, %v437_v24  ;;  %v1487_v31 = vstv %s975_s21  ;;  %v1490_v32 = vstv %s1435_s20 }
  0x41   :  { %v444_v27 = vadd.f32 %v442_v18, %v438_v28  ;;  %v1494_v58 = vstv %s976_s22  ;;  %v1497_v62 = vstv %s1375_s14  ;;  %v1500_v63 = vstv %s1397_s17  ;;  %2020 = vst [vmem:[#allocation50_spill] sm:$0xff] %v1505_v9  ;;  %s1201_s14 = smov [#allocation15]  }
  0x42   :  { %2017 = vst [vmem:[#allocation47_spill] sm:$0xff] %v1497_v62  ;;  %v1503_v8 = vstv %s1453_s5  ;;  %v449_v12 = vadd.f32 %v447_v22, %v443_v26  ;;  %v1512_v13 = vstv %s1463_s23  ;;  %v1520_v17 = vmul.f32 0.99999, %v556_v25  ;;  %v1533_v26 = vld [vmem:[#allocation9 + $0x78] sm:$0xff]  ;;  %v577_v62 = vld [vmem:[#allocation11 + $0xe] sm:$0x3] }
  0x43   :  { %2018 = vst [vmem:[#allocation48_spill] sm:$0xff] %v1500_v63  ;;  %v450_v59 = vadd.f32 %v448_v23, %v444_v27  ;;  %v1523_v18 = vstv %s1465_s0  ;;  %v1525_v24 = vmul.f32 0.99999, %v557_v33  ;;  %v1527_v28 = vmul.f32 0.99999, %v558_v39  ;;  %s948_s3 = sshll.u32 %s1201_s14, 4  ;;  %s949_s3 = int_to_ptr.vmem [resolvable:$true] %s948_s3 }
  0x44   :  { %2019 = vst [vmem:[#allocation49_spill] sm:$0xff] %v1503_v8  ;;  %v1529_v0 = vmul.f32 0.99999, %v559_v40  ;;  %v451_v22 = vmul.f32 %v449_v12, %v1351_v42  ;;  %v583_v27 = vstv %s1473_s24  ;;  %s592_s25 = smul.f32 0.99999, %s1473_s24  ;;  %v563_v12 = vld [vmem:[#allocation8 + $0x78] sm:$0xff] }
  0x45   :  { %2021 = vst [vmem:[#allocation51_spill] sm:$0xff] %v1523_v18  ;;  %v452_v23 = vmul.f32 %v450_v59, %v1351_v42  ;;  %v1537_v54 = vmul.f32 0.99999, %v560_v55  ;;  %v584_v53 = vmul.f32 %v583_v27, %v1492_v50  ;;  %v585_v52 = vmul.f32 %v583_v27, %v1505_v9  ;;  %v576_v63 = vld [vmem:[#allocation11 + $0xc] sm:$0x3] }
  0x46   :  { %2022 = vst [vmem:[#allocation52_spill] sm:$0xff] %v1525_v24  ;;  %v586_v51 = vmul.f32 %v583_v27, %v1507_v56  ;;  %v587_v48 = vmul.f32 %v583_v27, %v1509_v57  ;;  %v588_v59 = vmul.f32 %v583_v27, %v1514_v14  ;;  %v589_v42 = vmul.f32 %v583_v27, %v1516_v15  ;;  %s593_s26 = ssub.f32 1.0, %s592_s25  ;;  %s683_s27 = smul.f32 0.1, %s1473_s24 }
  0x47   :  { %v453_v47 = vadd.f32 %v452_v23, %v451_v22  ;;  %v590_v11 = vmul.f32 %v583_v27, %v1518_v16  ;;  %v591_v10 = vmul.f32 %v583_v27, %v1533_v26  ;;  %v1547_v7 = vmul.f32 0.99999, %v561_v46 }
  0x48   :  { %v1549_v6 = vmul.f32 0.99999, %v562_v41  ;;  %v1551_v5 = vmul.f32 0.99999, %v563_v12  ;;  %v594_v22 = vstv %s593_s26 }
  0x49   :  { %454 = vadd.xlane.f32.xlu1 %v453_v47  ;;  %v595_v2 = vmul.f32 %v594_v22, %v556_v25  ;;  %v596_v49 = vmul.f32 %v594_v22, %v557_v33  ;;  %v597_v27 = vmul.f32 %v594_v22, %v558_v39  ;;  %v598_v45 = vmul.f32 %v594_v22, %v559_v40  ;;  %v575_v47 = vld [vmem:[#allocation11 + $0xa] sm:$0x3] }
  0x4a   :  { %v599_v44 = vmul.f32 %v594_v22, %v560_v55  ;;  %v600_v43 = vmul.f32 %v594_v22, %v561_v46  ;;  %v601_v38 = vmul.f32 %v594_v22, %v562_v41  ;;  %v602_v37 = vmul.f32 %v594_v22, %v563_v12 }
  0x4b   :  { %v603_v35 = vadd.f32 %v595_v2, %v584_v53  ;;  %v604_v18 = vadd.f32 %v596_v49, %v585_v52  ;;  %v605_v8 = vadd.f32 %v597_v27, %v586_v51  ;;  %v606_v23 = vadd.f32 %v598_v45, %v587_v48  ;;  %v579_v49 = vld [vmem:[#allocation12 + $0x8] sm:$0x3]  ;;  %v581_v51 = vld [vmem:[#allocation12 + $0xc] sm:$0x3]  ;;  %v582_v52 = vld [vmem:[#allocation12 + $0xe] sm:$0x3] }
  0x4c   :  { %v607_v4 = vadd.f32 %v599_v44, %v588_v59  ;;  %v608_v24 = vadd.f32 %v600_v43, %v589_v42  ;;  %v609_v9 = vadd.f32 %v601_v38, %v590_v11  ;;  %v610_v3 = vadd.f32 %v602_v37, %v591_v10  ;;  %v580_v10 = vld [vmem:[#allocation12 + $0xa] sm:$0x3] }
  0x4d   :  { %v622_v25 = vsub.f32 %v1509_v57, %v1529_v0  ;;  %v623_v46 = vsub.f32 %v1514_v14, %v1537_v54  ;;  %v624_v41 = vsub.f32 %v1516_v15, %v1547_v7  ;;  %v625_v2 = vsub.f32 %v1518_v16, %v1549_v6  ;;  %v2053_v16 = vld [vmem:[#allocation42_spill] sm:$0xff] }
  0x4e   :  { %v631_v44 = vperm.slane %v574_v36, 0  ;;  %v632_v42 = vperm.slane %v574_v36, 1  ;;  %v633_v11 = vperm.slane %v575_v47, 0  ;;  %v634_v37 = vperm.slane %v575_v47, 1 }
  0x4f   :  { %v635_v38 = vperm.slane %v576_v63, 0  ;;  %v636_v43 = vperm.slane %v576_v63, 1  ;;  %v637_v48 = vperm.slane %v577_v62, 0  ;;  %v638_v53 = vperm.slane %v577_v62, 1 }
  0x50   :  { %v647_v33 = vsel %vm132_vm7, %v631_v44, %v603_v35  ;;  %v648_v39 = vsel %vm132_vm7, %v632_v42, %v604_v18  ;;  %v649_v40 = vsel %vm132_vm7, %v633_v11, %v605_v8  ;;  %v650_v36 = vsel %vm132_vm7, %v634_v37, %v606_v23 }
  0x51   :  { %v651_v63 = vsel %vm132_vm7, %v635_v38, %v607_v4  ;;  %v652_v55 = vsel %vm132_vm7, %v636_v43, %v608_v24  ;;  %v653_v62 = vsel %vm132_vm7, %v637_v48, %v609_v9  ;;  %v654_v35 = vsel %vm132_vm7, %v638_v53, %v610_v3 }
  0x52   :  { %v659_v18 = vperm.slane %v579_v49, 0  ;;  %v660_v12 = vperm.slane %v579_v49, 1  ;;  %v661_v59 = vperm.slane %v580_v10, 0  ;;  %v662_v8 = vperm.slane %v580_v10, 1 }
  0x53   :  { %v663_v22 = vperm.slane %v581_v51, 0  ;;  %v664_v27 = vperm.slane %v581_v51, 1  ;;  %v665_v23 = vperm.slane %v582_v52, 0  ;;  %v666_v47 = vperm.slane %v582_v52, 1 }
  0x54   :  { %v1587_v4 = vsel %vm133_vm0, %v659_v18, %v647_v33  ;;  %v1591_v24 = vsel %vm133_vm0, %v660_v12, %v648_v39  ;;  %v1595_v9 = vsel %vm133_vm0, %v661_v59, %v649_v40  ;;  %v1600_v3 = vsel %vm133_vm0, %v662_v8, %v650_v36 }
  0x55   :  { %v1604_v49 = vsel %vm133_vm0, %v663_v22, %v651_v63  ;;  %v1608_v44 = vsel %vm133_vm0, %v664_v27, %v652_v55  ;;  %v1612_v42 = vsel %vm133_vm0, %v665_v23, %v653_v62  ;;  %v1616_v11 = vsel %vm133_vm0, %v666_v47, %v654_v35 }
  0x56   :  { %2023 = vst [vmem:[#allocation53_spill] sm:$0xff] %v1616_v11  ;;  %v684_v10 = vmul.f32 %v1587_v4, %v1378_v60  ;;  %v685_v37 = vmul.f32 %v1591_v24, %v1378_v60  ;;  %v686_v38 = vmul.f32 %v1595_v9, %v1468_v29  ;;  %v687_v43 = vmul.f32 %v1600_v3, %v1468_v29 }
  0x57   :  { %v690_v48 = vmul.f32 %v1604_v49, %v1471_v30  ;;  %v691_v51 = vmul.f32 %v1608_v44, %v1471_v30  ;;  %v694_v52 = vmul.f32 %v1612_v42, %v1487_v31  ;;  %v695_v33 = vmul.f32 %v1616_v11, %v1487_v31 }
  0x58   :  { %v688_v53 = vadd.f32 %v686_v38, %v684_v10  ;;  %v1634_v39 = vstv %s683_s27  ;;  %v705_v40 = vmul.f32 %v1587_v4, %v1381_v61  ;;  %v689_v36 = vadd.f32 %v687_v43, %v685_v37 }
  0x59   :  { %v706_v63 = vmul.f32 %v1591_v24, %v1381_v61  ;;  %v707_v55 = vmul.f32 %v1595_v9, %v1476_v34  ;;  %v708_v62 = vmul.f32 %v1600_v3, %v1476_v34  ;;  %v711_v18 = vmul.f32 %v1604_v49, %v1479_v19 }
  0x5a   :  { %v692_v35 = vadd.f32 %v690_v48, %v688_v53  ;;  %v712_v12 = vmul.f32 %v1608_v44, %v1479_v19  ;;  %v715_v59 = vmul.f32 %v1612_v42, %v1494_v58  ;;  %v693_v8 = vadd.f32 %v691_v51, %v689_v36 }
  0x5b   :  { %v709_v22 = vadd.f32 %v707_v55, %v705_v40  ;;  %v710_v27 = vadd.f32 %v708_v62, %v706_v63  ;;  %v716_v23 = vmul.f32 %v1616_v11, %v1494_v58  ;;  %v727_v10 = vmul.f32 %v1587_v4, %v1482_v20 }
  0x5c   :  { %v696_v47 = vadd.f32 %v694_v52, %v692_v35  ;;  %v728_v37 = vmul.f32 %v1591_v24, %v1482_v20  ;;  %v729_v38 = vmul.f32 %v1595_v9, %v1485_v21  ;;  %v697_v43 = vadd.f32 %v695_v33, %v693_v8 }
  0x5d   :  { %v713_v48 = vadd.f32 %v711_v18, %v709_v22  ;;  %v714_v53 = vadd.f32 %v712_v12, %v710_v27  ;;  %v730_v51 = vmul.f32 %v1600_v3, %v1485_v21  ;;  %v733_v52 = vmul.f32 %v1604_v49, %v1490_v32  ;;  %v2025_v27 = vld [vmem:[#allocation50_spill] sm:$0xff] }
  0x5e   :  { %v699_v40 = vadd.f32 %v1634_v39, %v696_v47  ;;  %v731_v36 = vadd.f32 %v729_v38, %v727_v10  ;;  %v734_v63 = vmul.f32 %v1608_v44, %v1490_v32  ;;  %v700_v55 = vadd.f32 %v1634_v39, %v697_v43  ;;  %v2026_v47 = vld [vmem:[#allocation52_spill] sm:$0xff] }
  0x5f   :  { %v717_v62 = vadd.f32 %v715_v59, %v713_v48  ;;  %v718_v35 = vadd.f32 %v716_v23, %v714_v53  ;;  %v732_v45 = vadd.f32 %v730_v51, %v728_v37  ;;  %v2024_v33 = vsub.f32 %v1492_v50, %v1520_v17  ;;  %v2028_v50 = vld [vmem:[#allocation47_spill] sm:$0xff] }
  0x60   :  { %v735_v12 = vadd.f32 %v733_v52, %v731_v36  ;;  %v737_v8 = vmul.f32 %v1612_v42, %v1512_v13  ;;  %v738_v22 = vmul.f32 %v1616_v11, %v1512_v13  ;;  %v2027_v10 = vsub.f32 %v2025_v27, %v2026_v47 }
  0x61   :  { %v701_v18 = vsub.f32 %v699_v40, %v2024_v33  ;;  %v719_v43 = vadd.f32 %v717_v62, %v1634_v39  ;;  %v720_v59 = vadd.f32 %v718_v35, %v1634_v39  ;;  %v736_v23 = vadd.f32 %v734_v63, %v732_v45  ;;  %v2030_v63 = vld [vmem:[#allocation48_spill] sm:$0xff]  ;;  %v2031_v33 = vld [vmem:[#allocation49_spill] sm:$0xff] }
  0x62   :  { %v702_v38 = vsub.f32 %v700_v55, %v2027_v10  ;;  %v739_v48 = vadd.f32 %v737_v8, %v735_v12  ;;  %v749_v17 = vmul.f32 %v1587_v4, %v2028_v50  ;;  %v750_v53 = vmul.f32 %v1591_v24, %v2028_v50 }
  0x63   :  { %v703_v37 = vmul.f32 %v701_v18, %v701_v18  ;;  %v2029_v40 = vsub.f32 %v1507_v56, %v1527_v28  ;;  %v722_v52 = vsub.f32 %v720_v59, %v622_v25  ;;  %v740_v55 = vadd.f32 %v738_v22, %v736_v23  ;;  %v2032_v22 = vld [vmem:[#allocation51_spill] sm:$0xff] }
  0x64   :  { %v704_v51 = vmul.f32 %v702_v38, %v702_v38  ;;  %v741_v45 = vadd.f32 %v739_v48, %v1634_v39  ;;  %v751_v62 = vmul.f32 %v1595_v9, %v2030_v63  ;;  %v752_v35 = vmul.f32 %v1600_v3, %v2030_v63 }
  0x65   :  { %v721_v36 = vsub.f32 %v719_v43, %v2029_v40  ;;  %v755_v18 = vmul.f32 %v1604_v49, %v2031_v33  ;;  %v724_v8 = vmul.f32 %v722_v52, %v722_v52  ;;  %v742_v56 = vadd.f32 %v740_v55, %v1634_v39  ;;  %v2033_v40 = vld [vmem:[#allocation30_spill] sm:$0xff]  ;;  %v2037_v52 = vld [vmem:[#allocation35_spill] sm:$0xff] }
  0x66   :  { %v756_v0 = vmul.f32 %v1608_v44, %v2031_v33  ;;  %v743_v57 = vsub.f32 %v741_v45, %v623_v46  ;;  %v753_v28 = vadd.f32 %v751_v62, %v749_v17  ;;  %v754_v25 = vadd.f32 %v752_v35, %v750_v53  ;;  %v2034_v46 = vld [vmem:[#allocation31_spill] sm:$0xff]  ;;  %v2035_v53 = vld [vmem:[#allocation32_spill] sm:$0xff] }
  0x67   :  { %v723_v12 = vmul.f32 %v721_v36, %v721_v36  ;;  %v759_v27 = vmul.f32 %v1612_v42, %v2032_v22  ;;  %v726_v10 = vadd.f32 %v724_v8, %v704_v51  ;;  %v744_v38 = vsub.f32 %v742_v56, %v624_v41  ;;  %v2036_v51 = vld [vmem:[#allocation33_spill] sm:$0xff]  ;;  %v2038_v62 = vld [vmem:[#allocation36_spill] sm:$0xff]  ;;  %v2040_v8 = vld [vmem:[#allocation38_spill] sm:$0xff] }
  0x68   :  { %v760_v43 = vmul.f32 %v1616_v11, %v2032_v22  ;;  %v745_v59 = vmul.f32 %v743_v57, %v743_v57  ;;  %v757_v23 = vadd.f32 %v755_v18, %v753_v28  ;;  %v758_v48 = vadd.f32 %v756_v0, %v754_v25  ;;  %v2039_v18 = vld [vmem:[#allocation37_spill] sm:$0xff]  ;;  %v2041_v28 = vld [vmem:[#allocation22_spill] sm:$0xff] }
  0x69   :  { %v725_v47 = vadd.f32 %v723_v12, %v703_v37  ;;  %v1709_v54 = vmul.f32 0.99999, %v2033_v40  ;;  %v746_v14 = vmul.f32 %v744_v38, %v744_v38  ;;  %v1712_v17 = vmul.f32 0.99999, %v2034_v46  ;;  %v2046_v40 = vld [vmem:[#allocation27_spill] sm:$0xff] }
  0x6a   :  { %v1715_v37 = vmul.f32 0.99999, %v2035_v53  ;;  %v1718_v36 = vmul.f32 0.99999, %v2036_v51  ;;  %v761_v15 = vadd.f32 %v759_v27, %v757_v23  ;;  %v762_v41 = vadd.f32 %v760_v43, %v758_v48  ;;  %v2042_v27 = vld [vmem:[#allocation23_spill] sm:$0xff]  ;;  %v2044_v43 = vld [vmem:[#allocation25_spill] sm:$0xff] }
  0x6b   :  { %v747_v7 = vadd.f32 %v745_v59, %v725_v47  ;;  %v1721_v55 = vmul.f32 0.99999, %v2037_v52  ;;  %v748_v45 = vadd.f32 %v746_v14, %v726_v10  ;;  %v1724_v35 = vmul.f32 0.99999, %v2038_v62  ;;  %v2043_v10 = vld [vmem:[#allocation24_spill] sm:$0xff]  ;;  %v2045_v23 = vld [vmem:[#allocation26_spill] sm:$0xff] }
  0x6c   :  { %v1727_v12 = vmul.f32 0.99999, %v2039_v18  ;;  %v1730_v56 = vmul.f32 0.99999, %v2040_v8  ;;  %v763_v0 = vadd.f32 %v761_v15, %v1634_v39  ;;  %v764_v57 = vadd.f32 %v762_v41, %v1634_v39  ;;  %v2049_v51 = vld [vmem:[#allocation29_spill] sm:$0xff]  ;;  %v2050_v41 = vld [vmem:[#allocation39_spill] sm:$0xff] }
  0x6d   :  { %v225_v25 = vsub.f32 %v2041_v28, %v1709_v54  ;;  %v226_v47 = vsub.f32 %v2042_v27, %v1712_v17  ;;  %v2047_v54 = vsub.f32 %v1533_v26, %v1551_v5  ;;  %v2048_v17 = vld [vmem:[#allocation28_spill] sm:$0xff]  ;;  %v295_v52 = vmul.f32 %v1378_v60, %v2050_v41  ;;  %v2052_v8 = vld [vmem:[#allocation41_spill] sm:$0xff] }
  0x6e   :  { %v765_v39 = vsub.f32 %v763_v0, %v625_v2  ;;  %v2051_v62 = vld [vmem:[#allocation40_spill] sm:$0xff]  ;;  %v298_v6 = vmul.f32 %v1468_v29, %v2052_v8  ;;  %v299_v5 = vmul.f32 %v1468_v29, %v2053_v16  ;;  %v2054_v0 = vld [vmem:[#allocation43_spill] sm:$0xff]  ;;  %v2056_v53 = vld [vmem:[#allocation45_spill] sm:$0xff]  ;;  %v1777_v29 = vstv %s293_s1 }
  0x6f   :  { %v766_v46 = vsub.f32 %v764_v57, %v2047_v54  ;;  %v296_v18 = vmul.f32 %v1378_v60, %v2051_v62  ;;  %v303_v57 = vmul.f32 %v1471_v30, %v2054_v0  ;;  %v2055_v28 = vld [vmem:[#allocation44_spill] sm:$0xff]  ;;  %v308_v14 = vmul.f32 %v1487_v31, %v2056_v53  ;;  %v2057_v60 = vld [vmem:[#allocation46_spill] sm:$0xff] }
  0x70   :  { %v767_v26 = vmul.f32 %v765_v39, %v765_v39  ;;  %v304_v27 = vmul.f32 %v1471_v30, %v2055_v28  ;;  %v300_v54 = vadd.f32 %v298_v6, %v295_v52  ;;  %v309_v48 = vmul.f32 %v1487_v31, %v2057_v60 }
  0x71   :  { %v768_v2 = vmul.f32 %v766_v46, %v766_v46  ;;  %v301_v15 = vadd.f32 %v299_v5, %v296_v18  ;;  %v320_v39 = vmul.f32 %v1381_v61, %v2050_v41  ;;  %v321_v30 = vmul.f32 %v1381_v61, %v2051_v62 }
  0x72   :  { %v1773_v59 = vadd.f32 %v767_v26, %v747_v7  ;;  %v305_v46 = vadd.f32 %v303_v57, %v300_v54  ;;  %v323_v52 = vmul.f32 %v1476_v34, %v2052_v8  ;;  %v324_v7 = vmul.f32 %v1476_v34, %v2053_v16 }
  0x73   :  { %v1775_v38 = vadd.f32 %v768_v2, %v748_v45  ;;  %v306_v11 = vadd.f32 %v304_v27, %v301_v15  ;;  %v328_v45 = vmul.f32 %v1479_v19, %v2054_v0  ;;  %v329_v18 = vmul.f32 %v1479_v19, %v2055_v28 }
  0x74   :  { %v310_v6 = vadd.f32 %v308_v14, %v305_v46  ;;  %v325_v5 = vadd.f32 %v323_v52, %v320_v39  ;;  %v333_v61 = vmul.f32 %v1494_v58, %v2056_v53  ;;  %v326_v26 = vadd.f32 %v324_v7, %v321_v30 }
  0x75   :  { %v771_v31 = vadd.f32 %v1775_v38, %v1773_v59  ;;  %v311_v15 = vadd.f32 %v309_v48, %v306_v11  ;;  %v334_v2 = vmul.f32 %v1494_v58, %v2057_v60  ;;  %v346_v34 = vmul.f32 %v1482_v20, %v2050_v41 }
  0x76   :  { %v347_v57 = vmul.f32 %v1482_v20, %v2051_v62  ;;  %v313_v27 = vadd.f32 %v1777_v29, %v310_v6  ;;  %v330_v11 = vadd.f32 %v328_v45, %v325_v5  ;;  %v349_v48 = vmul.f32 %v1485_v21, %v2052_v8 }
  0x77   :  { %772 = vadd.xlane.f32.xlu2 %v771_v31  ;;  %v314_v19 = vadd.f32 %v1777_v29, %v311_v15  ;;  %v331_v14 = vadd.f32 %v329_v18, %v326_v26  ;;  %v350_v54 = vmul.f32 %v1485_v21, %v2053_v16  ;;  %v354_v58 = vmul.f32 %v1490_v32, %v2054_v0 }
  0x78   :  { %v355_v39 = vmul.f32 %v1490_v32, %v2055_v28  ;;  %v315_v46 = vsub.f32 %v313_v27, %v225_v25  ;;  %v335_v30 = vadd.f32 %v333_v61, %v330_v11  ;;  %v351_v52 = vadd.f32 %v349_v48, %v346_v34 }
  0x79   :  { %v316_v20 = vsub.f32 %v314_v19, %v226_v47  ;;  %v336_v31 = vadd.f32 %v334_v2, %v331_v14  ;;  %v352_v7 = vadd.f32 %v350_v54, %v347_v57  ;;  %v359_v45 = vmul.f32 %v1512_v13, %v2056_v53 }
  0x7a   :  { %v360_v18 = vmul.f32 %v1512_v13, %v2057_v60  ;;  %v317_v6 = vmul.f32 %v315_v46, %v315_v46  ;;  %v337_v15 = vadd.f32 %v335_v30, %v1777_v29  ;;  %v356_v5 = vadd.f32 %v354_v58, %v351_v52 }
  0x7b   :  { %v318_v21 = vmul.f32 %v316_v20, %v316_v20  ;;  %v338_v26 = vadd.f32 %v336_v31, %v1777_v29  ;;  %v357_v32 = vadd.f32 %v355_v39, %v352_v7  ;;  %v372_v25 = vmul.f32 %v2028_v50, %v2050_v41 }
  0x7c   :  { %v373_v47 = vmul.f32 %v2028_v50, %v2051_v62  ;;  %v2058_v61 = vsub.f32 %v2043_v10, %v1715_v37  ;;  %v361_v34 = vadd.f32 %v359_v45, %v356_v5  ;;  %v375_v13 = vmul.f32 %v2030_v63, %v2052_v8 }
  0x7d   :  { %v376_v57 = vmul.f32 %v2030_v63, %v2053_v16  ;;  %v2059_v27 = vsub.f32 %v2044_v43, %v1718_v36  ;;  %v362_v11 = vadd.f32 %v360_v18, %v357_v32  ;;  %v380_v48 = vmul.f32 %v2031_v33, %v2054_v0 }
  0x7e   :  { %v339_v2 = vsub.f32 %v337_v15, %v2058_v61  ;;  %v381_v50 = vmul.f32 %v2031_v33, %v2055_v28  ;;  %v363_v10 = vadd.f32 %v361_v34, %v1777_v29  ;;  %v377_v14 = vadd.f32 %v375_v13, %v372_v25 }
  0x7f   :  { %v340_v19 = vsub.f32 %v338_v26, %v2059_v27  ;;  %v378_v54 = vadd.f32 %v376_v57, %v373_v47  ;;  %v364_v39 = vadd.f32 %v362_v11, %v1777_v29  ;;  %v385_v63 = vmul.f32 %v2032_v22, %v2056_v53 }
  0x80   :  { %v341_v37 = vmul.f32 %v339_v2, %v339_v2  ;;  %v386_v36 = vmul.f32 %v2032_v22, %v2057_v60  ;;  %v2060_v46 = vsub.f32 %v2045_v23, %v1721_v55  ;;  %v382_v33 = vadd.f32 %v380_v48, %v377_v14 }
  0x81   :  { %v342_v58 = vmul.f32 %v340_v19, %v340_v19  ;;  %v383_v30 = vadd.f32 %v381_v50, %v378_v54  ;;  %v2061_v31 = vsub.f32 %v2046_v40, %v1724_v35  ;;  %v472_v45 = vrot.slane %v2050_v41, 7 }
  0x82   :  { %v343_v43 = vadd.f32 %v341_v37, %v317_v6  ;;  %v365_v20 = vsub.f32 %v363_v10, %v2060_v46  ;;  %v473_v18 = vrot.slane %v2051_v62, 7  ;;  %v387_v5 = vadd.f32 %v385_v63, %v382_v33 }
  0x83   :  { %v344_v52 = vadd.f32 %v342_v58, %v318_v21  ;;  %v366_v7 = vsub.f32 %v364_v39, %v2061_v31  ;;  %v388_v26 = vadd.f32 %v386_v36, %v383_v30  ;;  %v474_v22 = vrot.slane %v2052_v8, 7 }
  0x84   :  { %v367_v15 = vmul.f32 %v365_v20, %v365_v20  ;;  %v475_v55 = vrot.slane %v2053_v16, 7  ;;  %v476_v23 = vrot.slane %v2054_v0, 7  ;;  %v477_v21 = vrot.slane %v2055_v28, 7 }
  0x85   :  { %v368_v6 = vmul.f32 %v366_v7, %v366_v7  ;;  %v389_v35 = vadd.f32 %v387_v5, %v1777_v29  ;;  %v390_v40 = vadd.f32 %v388_v26, %v1777_v29  ;;  %v478_v25 = vrot.slane %v2056_v53, 7 }
  0x86   :  { %v369_v32 = vadd.f32 %v367_v15, %v343_v43  ;;  %v479_v61 = vrot.slane %v2057_v60, 7  ;;  %v488_v2 = vsub.f32 %v2050_v41, %v472_v45  ;;  %v489_v34 = vsub.f32 %v2051_v62, %v473_v18 }
  0x87   :  { %v370_v47 = vadd.f32 %v368_v6, %v344_v52  ;;  %v2062_v13 = vsub.f32 %v2048_v17, %v1727_v12  ;;  %v2063_v27 = vsub.f32 %v2049_v51, %v1730_v56  ;;  %v490_v11 = vsub.f32 %v2052_v8, %v474_v22 }
  0x88   :  { %v491_v29 = vsub.f32 %v2053_v16, %v475_v55  ;;  %v492_v48 = vsub.f32 %v2054_v0, %v476_v23  ;;  %v493_v50 = vsub.f32 %v2055_v28, %v477_v21  ;;  %v494_v41 = vsub.f32 %v2056_v53, %v478_v25 }
  0x89   :  { %v391_v57 = vsub.f32 %v389_v35, %v2062_v13  ;;  %v392_v19 = vsub.f32 %v390_v40, %v2063_v27  ;;  %v495_v62 = vsub.f32 %v2057_v60, %v479_v61  ;;  %v496_v12 = vmul.f32 %v488_v2, %v488_v2 }
  0x8a   :  { %v497_v17 = vmul.f32 %v489_v34, %v489_v34  ;;  %v498_v14 = vmul.f32 %v490_v11, %v490_v11  ;;  %v499_v54 = vmul.f32 %v491_v29, %v491_v29  ;;  %v500_v56 = vmul.f32 %v492_v48, %v492_v48  ;;  %v2066_v34 = vld [vmem:[#allocation53_spill] sm:$0xff] }
  0x8b   :  { %v393_v37 = vmul.f32 %v391_v57, %v391_v57  ;;  %v394_v10 = vmul.f32 %v392_v19, %v392_v19  ;;  %v501_v51 = vmul.f32 %v493_v50, %v493_v50  ;;  %v502_v39 = vmul.f32 %v494_v41, %v494_v41 }
  0x8c   :  { %v503_v16 = vmul.f32 %v495_v62, %v495_v62  ;;  %v512_v0 = vrot.slane %v496_v12, 1  ;;  %v513_v28 = vrot.slane %v497_v17, 1  ;;  %v514_v60 = vrot.slane %v498_v14, 1 }
  0x8d   :  { %v395_v58 = vadd.f32 %v393_v37, %v369_v32  ;;  %v396_v8 = vadd.f32 %v394_v10, %v370_v47  ;;  %v515_v63 = vrot.slane %v499_v54, 1  ;;  %v516_v43 = vrot.slane %v500_v56, 1 }
  0x8e   :  { %v517_v46 = vrot.slane %v501_v51, 1  ;;  %v518_v20 = vrot.slane %v502_v39, 1  ;;  %v519_v33 = vrot.slane %v503_v16, 1  ;;  %v782_v30 = vsel %vm1875_vm8, %v1773_v59, 0.0 }
  0x8f   :  { %v397_v36 = vadd.f32 %v396_v8, %v395_v58  ;;  %v783_v1 = vsel %vm1875_vm8, %v1775_v38, 0.0  ;;  %v529_v52 = vsel %vm528_vm9, %v512_v0, 0.0  ;;  %v530_v31 = vsel %vm528_vm9, %v513_v28, 0.0 }
  0x90   :  { %v532_v7 = vsel %vm528_vm9, %v514_v60, 0.0  ;;  %v534_v45 = vsel %vm528_vm9, %v515_v63, 0.0  ;;  %v531_v18 = vadd.f32 %v530_v31, %v529_v52  ;;  %v536_v15 = vsel %vm528_vm9, %v516_v43, 0.0  ;;  %v796_v63 = vld [vmem:[#allocation14 + $0x40] sm:$0xff] }
  0x91   :  { %398 = vadd.xlane.f32.xlu0 %v397_v36  ;;  %v538_v5 = vsel %vm528_vm9, %v517_v46, 0.0  ;;  %v540_v59 = vsel %vm528_vm9, %v518_v20, 0.0  ;;  %v542_v26 = vsel %vm528_vm9, %v519_v33, 0.0  ;;  %v784_v22 = vadd.f32 %v783_v1, %v782_v30  ;;  %v797_v46 = vld [vmem:[#allocation14 + $0x48] sm:$0xff]  ;;  %v798_v20 = vld [vmem:[#allocation14 + $0x50] sm:$0xff]  ;;  %v799_v33 = vld [vmem:[#allocation14 + $0x58] sm:$0xff] }
  0x92   :  { %v408_v38 = vsel %vm1875_vm8, %v395_v58, 0.0  ;;  %v409_v6 = vsel %vm1875_vm8, %v396_v8, 0.0  ;;  %v533_v55 = vadd.f32 %v532_v7, %v531_v18  ;;  %v847_v21 = vrot.slane %v1587_v4, 7  ;;  %v800_v7 = vld [vmem:[#allocation14 + $0x60] sm:$0xff]  ;;  %v802_v18 = vld [vmem:[#allocation14 + $0x70] sm:$0xff] }
  0x93   :  { %v410_v23 = vadd.f32 %v409_v6, %v408_v38  ;;  %v848_v32 = vrot.slane %v1591_v24, 7  ;;  %785 = vadd.xlane.f32.xlu2 %v784_v22  ;;  %v849_v35 = vrot.slane %v1595_v9, 7  ;;  %v850_v40 = vrot.slane %v1600_v3, 7  ;;  %v803_v6 = vld [vmem:[#allocation14 + $0x78] sm:$0xff] }
  0x94   :  { %v851_v25 = vrot.slane %v1604_v49, 7  ;;  %v852_v47 = vrot.slane %v1608_v44, 7  ;;  %v535_v61 = vadd.f32 %v534_v45, %v533_v55  ;;  %v853_v2 = vrot.slane %v1612_v42, 7  ;;  %v801_v45 = vld [vmem:[#allocation14 + $0x68] sm:$0xff] }
  0x95   :  { %v854_v13 = vrot.slane %v2066_v34, 7  ;;  %v863_v57 = vsub.f32 %v1587_v4, %v847_v21  ;;  %v864_v27 = vsub.f32 %v1591_v24, %v848_v32  ;;  %v865_v19 = vsub.f32 %v1595_v9, %v849_v35 }
  0x96   :  { %v866_v11 = vsub.f32 %v1600_v3, %v850_v40  ;;  %v867_v29 = vsub.f32 %v1604_v49, %v851_v25  ;;  %v537_v48 = vadd.f32 %v536_v15, %v535_v61  ;;  %v868_v50 = vsub.f32 %v1608_v44, %v852_v47 }
  0x97   :  { %v869_v41 = vsub.f32 %v1612_v42, %v853_v2  ;;  %v870_v62 = vsub.f32 %v2066_v34, %v854_v13  ;;  %v871_v37 = vmul.f32 %v863_v57, %v863_v57  ;;  %v872_v10 = vmul.f32 %v864_v27, %v864_v27 }
  0x98   :  { %v873_v12 = vmul.f32 %v865_v19, %v865_v19  ;;  %v874_v17 = vmul.f32 %v866_v11, %v866_v11  ;;  %v539_v14 = vadd.f32 %v538_v5, %v537_v48  ;;  %v875_v54 = vmul.f32 %v867_v29, %v867_v29 }
  0x99   :  { %411 = vadd.xlane.f32.xlu0 %v410_v23  ;;  %v876_v56 = vmul.f32 %v868_v50, %v868_v50  ;;  %v877_v51 = vmul.f32 %v869_v41, %v869_v41  ;;  %v878_v58 = vmul.f32 %v870_v62, %v870_v62  ;;  %v887_v8 = vrot.slane %v871_v37, 1 }
  0x9a   :  { %v888_v39 = vrot.slane %v872_v10, 1  ;;  %v889_v16 = vrot.slane %v873_v12, 1  ;;  %v541_v53 = vadd.f32 %v540_v59, %v539_v14  ;;  %v890_v0 = vrot.slane %v874_v17, 1  ;;  %v2067_v10 = vld [vmem:[#allocation34_spill] sm:$0xff] }
  0x9b   :  { %v891_v28 = vrot.slane %v875_v54, 1  ;;  %v892_v60 = vrot.slane %v876_v56, 1  ;;  %v903_v36 = vsel %vm528_vm9, %v887_v8, 0.0  ;;  %v893_v1 = vrot.slane %v877_v51, 1 }
  0x9c   :  { %v904_v43 = vsel %vm528_vm9, %v888_v39, 0.0  ;;  %v543_v30 = vadd.f32 %v542_v26, %v541_v53  ;;  %v906_v31 = vsel %vm528_vm9, %v889_v16, 0.0  ;;  %v894_v15 = vrot.slane %v878_v58, 1 }
  0x9d   :  { %v905_v52 = vadd.f32 %v904_v43, %v903_v36  ;;  %v908_v5 = vsel %vm528_vm9, %v890_v0, 0.0  ;;  %v910_v59 = vsel %vm528_vm9, %v891_v28, 0.0  ;;  %v912_v22 = vsel %vm528_vm9, %v892_v60, 0.0 }
  0x9e   :  { %544 = vadd.xlane.f32.xlu1 %v543_v30  ;;  %v804_v55 = vsub.f32 %v1587_v4, %v796_v63  ;;  %v805_v26 = vsub.f32 %v1591_v24, %v797_v46  ;;  %v808_v23 = vsub.f32 %v1595_v9, %v798_v20  ;;  %v809_v21 = vsub.f32 %v1600_v3, %v799_v33 }
  0x9f   :  { %v907_v38 = vadd.f32 %v906_v31, %v905_v52  ;;  %v814_v32 = vsub.f32 %v1604_v49, %v800_v7  ;;  %v815_v35 = vsub.f32 %v1608_v44, %v801_v45  ;;  %v820_v40 = vsub.f32 %v1612_v42, %v802_v18 }
  0xa0   :  { %v806_v47 = vmul.f32 %v804_v55, %v804_v55  ;;  %v807_v61 = vmul.f32 %v805_v26, %v805_v26  ;;  %v810_v2 = vmul.f32 %v808_v23, %v808_v23  ;;  %v811_v13 = vmul.f32 %v809_v21, %v809_v21 }
  0xa1   :  { %v909_v25 = vadd.f32 %v908_v5, %v907_v38  ;;  %v816_v57 = vmul.f32 %v814_v32, %v814_v32  ;;  %v817_v27 = vmul.f32 %v815_v35, %v815_v35  ;;  %v821_v4 = vsub.f32 %v2066_v34, %v803_v6 }
  0xa2   :  { %v812_v19 = vadd.f32 %v810_v2, %v806_v47  ;;  %v822_v9 = vmul.f32 %v820_v40, %v820_v40  ;;  %v914_v3 = vsel %vm528_vm9, %v893_v1, 0.0  ;;  %v813_v11 = vadd.f32 %v811_v13, %v807_v61 }
  0xa3   :  { %v911_v24 = vadd.f32 %v910_v59, %v909_v25  ;;  %v823_v49 = vmul.f32 %v821_v4, %v821_v4  ;;  %v916_v42 = vsel %vm528_vm9, %v894_v15, 0.0 }
  0xa4   :  { %v818_v44 = vadd.f32 %v816_v57, %v812_v19  ;;  %v819_v48 = vadd.f32 %v817_v27, %v813_v11 }
  0xa5   :  { %v913_v29 = vadd.f32 %v912_v22, %v911_v24 }
  0xa6   :  { %v824_v41 = vadd.f32 %v822_v9, %v818_v44  ;;  %v825_v62 = vadd.f32 %v823_v49, %v819_v48 }
  0xa7   :  { %v915_v50 = vadd.f32 %v914_v3, %v913_v29 }
  0xa8   :  { %v826_v12 = vmul.f32 %v824_v41, %v2067_v10  ;;  %v827_v34 = vmul.f32 %v825_v62, %v2067_v10 }
  0xa9   :  { %v917_v37 = vadd.f32 %v916_v42, %v915_v50  ;;  %v2068_v50 = vlaneseq }
  0xaa   :  { %v828_v17 = vadd.f32 %v827_v34, %v826_v12 }
  0xab   :  { %918 = vadd.xlane.f32.xlu1 %v917_v37  ;;  %v929_v41 = vand.u32 127, %v2068_v50 }
  0xac   :  { %829 = vadd.xlane.f32.xlu0 %v828_v17 }
  0xad   :  { %vm930_vm10 = vcmp.eq.s32.totalorder %v929_v41, 0  ;;  %vm933_vm11 = vcmp.eq.s32.totalorder %v929_v41, 1  ;;  %vm936_vm12 = vcmp.eq.s32.totalorder %v929_v41, 2  ;;  %vm939_vm13 = vcmp.eq.s32.totalorder %v929_v41, 3 }
  0xbc   :  { %v455_v54 = vpop.xlane.xlu1 %454 }
  0xbd   :  { %v456_v56 = vrot.slane %v455_v54, 4 }
  0xbf   :  { %v457_v39 = vadd.f32 %v456_v56, %v455_v54 }
  0xc1   :  { %v458_v63 = vrot.slane %v457_v39, 2 }
  0xc3   :  { %v459_v52 = vadd.f32 %v458_v63, %v457_v39 }
  0xc5   :  { %v460_v59 = vrot.slane %v459_v52, 1 }
  0xc7   :  { %v461_v21 = vadd.f32 %v460_v59, %v459_v52 }
  0xea   :  { %v773_v14 = vpop.xlane.xlu2 %772 }
  0xeb   :  { %v774_v28 = vrot.slane %v773_v14, 4 }
  0xed   :  { %v775_v33 = vadd.f32 %v774_v28, %v773_v14 }
  0xef   :  { %v776_v45 = vrot.slane %v775_v33, 2 }
  0xf1   :  { %v777_v26 = vadd.f32 %v776_v45, %v775_v33 }
  0xf3   :  { %v778_v40 = vrot.slane %v777_v26, 1 }
  0xf5   :  { %v779_v13 = vadd.f32 %v778_v40, %v777_v26 }
 0x104   :  { %v399_v51 = vpop.xlane.xlu0 %398 }
 0x105   :  { %v400_v58 = vrot.slane %v399_v51, 4 }
 0x106   :  { %v786_v16 = vpop.xlane.xlu2 %785 }
 0x107   :  { %v401_v8 = vadd.f32 %v400_v58, %v399_v51  ;;  %v787_v0 = vrot.slane %v786_v16, 4 }
 0x109   :  { %v402_v53 = vrot.slane %v401_v8, 2  ;;  %v788_v20 = vadd.f32 %v787_v0, %v786_v16 }
 0x10b   :  { %v403_v60 = vadd.f32 %v402_v53, %v401_v8  ;;  %v789_v7 = vrot.slane %v788_v20, 2 }
 0x10c   :  { %v412_v36 = vpop.xlane.xlu0 %411 }
 0x10d   :  { %v413_v43 = vrot.slane %v412_v36, 4  ;;  %v404_v46 = vrot.slane %v403_v60, 1  ;;  %v790_v6 = vadd.f32 %v789_v7, %v788_v20 }
 0x10f   :  { %v414_v30 = vadd.f32 %v413_v43, %v412_v36  ;;  %v405_v1 = vadd.f32 %v404_v46, %v403_v60  ;;  %v791_v35 = vrot.slane %v790_v6, 1 }
 0x111   :  { %v415_v31 = vrot.slane %v414_v30, 2  ;;  %980 = vpush %v405_v1  ;;  %v545_v18 = vpop.xlane.xlu1 %544  ;;  %v792_v61 = vadd.f32 %v791_v35, %v790_v6 }
 0x112   :  { %v546_v5 = vrot.slane %v545_v18, 4 }
 0x113   :  { %v416_v15 = vadd.f32 %v415_v31, %v414_v30 }
 0x114   :  { %v547_v38 = vadd.f32 %v546_v5, %v545_v18 }
 0x115   :  { %v417_v22 = vrot.slane %v416_v15, 1 }
 0x116   :  { %v548_v23 = vrot.slane %v547_v38, 2 }
 0x117   :  { %v418_v55 = vadd.f32 %v417_v22, %v416_v15 }
 0x118   :  { %v549_v32 = vadd.f32 %v548_v23, %v547_v38 }
 0x119   :  { %982 = vpush %v418_v55 }
 0x11a   :  { %984 = vpush %v461_v21  ;;  %v550_v25 = vrot.slane %v549_v32, 1 }
 0x11c   :  { %v551_v47 = vadd.f32 %v550_v25, %v549_v32 }
 0x11e   :  { %v919_v2 = vpop.xlane.xlu1 %918  ;;  %986 = vpush %v551_v47 }
 0x11f   :  { %v920_v57 = vrot.slane %v919_v2, 4  ;;  %988 = vpush %v779_v13  ;;  %v830_v4 = vpop.xlane.xlu0 %829 }
 0x120   :  { %990 = vpush %v792_v61  ;;  %v831_v24 = vrot.slane %v830_v4, 4 }
 0x121   :  { %v921_v27 = vadd.f32 %v920_v57, %v919_v2 }
 0x122   :  { %v832_v9 = vadd.f32 %v831_v24, %v830_v4 }
 0x123   :  { %v922_v19 = vrot.slane %v921_v27, 2 }
 0x124   :  { %v833_v11 = vrot.slane %v832_v9, 2 }
 0x125   :  { %v923_v3 = vadd.f32 %v922_v19, %v921_v27 }
 0x126   :  { %v834_v49 = vadd.f32 %v833_v11, %v832_v9 }
 0x127   :  { %v924_v29 = vrot.slane %v923_v3, 1 }
 0x128   :  { %v835_v44 = vrot.slane %v834_v49, 1 }
 0x129   :  { %v925_v48 = vadd.f32 %v924_v29, %v923_v3 }
 0x12a   :  { %v836_v42 = vadd.f32 %v835_v44, %v834_v49 }
 0x12c   :  { %992 = vpush %v836_v42 }
 0x12d   :  { %994 = vpush %v925_v48 }
 0x142   :  { %s981_s28 = spop %980 }
 0x14a   :  { %s983_s8 = spop %982 }
 0x14b   :  { %s985_s9 = spop %984 }
 0x14f   :  { %s987_s10 = spop %986 }
 0x150   :  { %s989_s2 = spop %988 }
 0x151   :  { %s781_s11 = sadd.f32 %s989_s2, %s981_s28  ;;  %s991_s4 = spop %990 }
 0x152   :  { %s794_s6 = sadd.f32 %s991_s4, %s983_s8 }
 0x153   :  { %v931_v62 = vstv %s781_s11 }
 0x154   :  { %v932_v37 = vsel %vm930_vm10, %v931_v62, 0.0  ;;  %v934_v10 = vstv %s794_s6 }
 0x155   :  { %v935_v12 = vsel %vm933_vm11, %v934_v10, %v932_v37 }
 0x15d   :  { %s993_s13 = spop %992 }
 0x15e   :  { %s838_s15 = sadd.f32 %s993_s13, %s985_s9  ;;  %s995_s16 = spop %994 }
 0x15f   :  { %s927_s17 = sadd.f32 %s995_s16, %s987_s10 }
 0x160   :  { %v937_v34 = vstv %s838_s15 }
 0x161   :  { %v938_v17 = vsel %vm936_vm12, %v937_v34, %v935_v12  ;;  %v940_v14 = vstv %s927_s17 }
 0x162   :  { %v941_v54 = vsel %vm939_vm13, %v940_v14, %v938_v17 }
 0x163   :  { %942 = vst [vmem:[#allocation15] sm:$0xff] %v941_v54 }
 0x164   :  { %953 = dma.vmem_to_hbm [thread:$0]  %s949_s3, 128, %s951_s12, [#allocation4]  }
 0x165   :  { %1187 = dma.done.wait [#allocation4], 128  }
 0x166   :  { %1188 = vsyncadd [#allocation4], 4294967168 }
 0x167   :  { %958 = vsyncpa [#allocation3], 1 }
 0x168   :  { %959 = vsyncpa [#allocation10], 1 }
 0x169   :  { %960 = vsyncpa [#allocation13], 1 }
 0x16a   :  { %961 = vsyncpa [#allocation4], 1 }
 0x16b   :  { %962 = vsyncpa [#allocation5], 1 }
 0x16c   :  { %963 = vsyncpa [#allocation7], 1 }

</bundles_post_ra>
